<compile_context>
chip_gen: v6e
topology: v6e:2x2x1
jax: 0.10.0
libtpu: 0.0.40
codegen_flags: <defaults>
</compile_context>

<pallas_src>
import functools

import jax
import jax.numpy as jnp
import numpy as np
from jax import lax
from jax.experimental import pallas as pl
from jax.experimental.pallas import tpu as pltpu


def _gru_chunk_kernel(t_ref, gi_ref, whh_ref, bhh_ref, hseq_ref, h_ref, *,
                      chunk, hp, padding_value, unroll):
    """One grid step == one (batch tile, time chunk) of GRU time steps.

    t_ref    : (bt, 1) int32    sequence lengths (padded batch rows have length 0)
    gi_ref   : (chunk, bt, 3Hp) bf16  precomputed x_t @ W_ih^T + b_ih (gates at 0/Hp/2Hp)
    whh_ref  : (Hp, 3Hp) bf16   gate-concatenated W_hh^T (gate order r, z, n -- PyTorch)
    bhh_ref  : (1, 3Hp) f32     gate-concatenated b_hh
    hseq_ref : (chunk, bt, Hp)  padded hidden-sequence output for this chunk
    h_ref    : (bt, Hp) f32     VMEM scratch -- hidden state carried across time chunks
    """
    c = pl.program_id(1)  # time-chunk index (axis 1 of the grid)

    @pl.when(c == 0)
    def _():
        h_ref[...] = jnp.zeros_like(h_ref)

    tlen = t_ref[...]                      # (bt, 1) int32
    whh = whh_ref[...]                     # (Hp, 3Hp) bf16 -- loaded once per grid step
    bhh = bhh_ref[...]                     # (1, 3Hp) f32
    pad = jnp.float32(padding_value)

    def step(i, h):
        t = c * chunk + i
        # single fused recurrent matmul: bf16 operands, f32 accumulation
        gh = jnp.dot(h.astype(jnp.bfloat16), whh,
                     preferred_element_type=jnp.float32) + bhh          # (bt, 3Hp)
        gi = gi_ref[i].astype(jnp.float32)                               # (bt, 3Hp)
        # lane-aligned gate slices (hp is a multiple of 128)
        r = jax.nn.sigmoid(gi[:, 0:hp] + gh[:, 0:hp])
        z = jax.nn.sigmoid(gi[:, hp:2 * hp] + gh[:, hp:2 * hp])
        n = jnp.tanh(gi[:, 2 * hp:3 * hp] + r * gh[:, 2 * hp:3 * hp])   # b_hn inside r*(...)
        h_new = (1.0 - z) * n + z * h

        # pack/pad semantics: past each example's length the state is frozen and the
        # emitted hidden vector is padding_value (the Linear then runs on that padding).
        mask = t < tlen                                                  # (bt, 1) bool
        hseq_ref[i] = jnp.where(mask, h_new, pad)
        return jnp.where(mask, h_new, h)

    h_ref[...] = lax.fori_loop(0, chunk, step, h_ref[...], unroll=unroll)


def _vmem_capacity_bytes(default=64 * 1024 * 1024):
    try:
        info = pltpu.get_tpu_info()
        return int(getattr(info, "vmem_capacity_bytes", default))
    except Exception:  # no TPU info available -> conservative (v7x-sized) default
        return default


def _pick_chunk(S, bt, hp, budget_bytes, max_chunk=128):
    # Double-buffered streaming footprint per time step:
    #   gi (bf16): bt*3Hp*2 B ; hseq (f32): bt*Hp*4 B ; x2 for double buffering.
    per_step = 2 * (bt * 3 * hp * 2 + bt * hp * 4)
    return int(max(1, min(max_chunk, S, budget_bytes // per_step)))


def general_rnn_forward(X, T, params, *, max_seq_len, padding_value, time_chunk=None):
    """X: (B, S, D) float32 batch-first, T: (B,) int32 lengths. Returns (B, S, O) logits."""
    B, S, D = X.shape
    assert S == max_seq_len
    H = params["whh_t"].shape[0]

    # Lane-dense hidden width and sublane-aligned batch.
    Hp = ((H + 127) // 128) * 128
    Bp = ((B + 7) // 8) * 8
    if Bp > 256:                                   # tile large batches (MXU full-row pushes)
        bt = 256
        Bp = ((Bp + bt - 1) // bt) * bt
    else:
        bt = Bp

    vmem_cap = _vmem_capacity_bytes()
    chunk = time_chunk or _pick_chunk(S, bt, Hp, int(vmem_cap * 0.6))
    chunk = max(1, min(chunk, S))
    nt = -(-S // chunk)                            # ceil: remainder handled by time padding
    Sp = nt * chunk
    unroll = min(chunk, 8)

    Xp = jnp.zeros((Bp, S, D), jnp.float32).at[:B].set(X.astype(jnp.float32))
    Tp = jnp.zeros((Bp, 1), jnp.int32).at[:B, 0].set(T.astype(jnp.int32))

    # Relocate the PyTorch gate-concatenated (., 3H) layouts to lane-aligned (., 3Hp).
    wih_p = jnp.zeros((D, 3, Hp), jnp.float32).at[:, :, :H].set(
        params["wih_t"].reshape(D, 3, H)).reshape(D, 3 * Hp)
    bih_p = jnp.zeros((3, Hp), jnp.float32).at[:, :H].set(
        params["bih"].reshape(3, H)).reshape(1, 3 * Hp)
    whh_p = jnp.zeros((Hp, 3, Hp), jnp.float32).at[:H, :, :H].set(
        params["whh_t"].reshape(H, 3, H)).reshape(Hp, 3 * Hp).astype(jnp.bfloat16)
    bhh_p = jnp.zeros((3, Hp), jnp.float32).at[:, :H].set(
        params["bhh"].reshape(3, H)).reshape(1, 3 * Hp)

    # Hoisted input projection: one big matmul, emitted time-major, stored bf16.
    gi = jnp.einsum("bsd,dg->sbg", Xp, wih_p,
                    preferred_element_type=jnp.float32) + bih_p          # (S, Bp, 3Hp)
    gi = gi.astype(jnp.bfloat16)
    if Sp > S:
        gi = jnp.concatenate(
            [gi, jnp.zeros((Sp - S, Bp, 3 * Hp), jnp.bfloat16)], axis=0)

    kernel = functools.partial(_gru_chunk_kernel, chunk=chunk, hp=Hp,
                               padding_value=float(padding_value), unroll=unroll)

    hseq = pl.pallas_call(
        kernel,
        out_shape=jax.ShapeDtypeStruct((Sp, Bp, Hp), jnp.float32),
        grid_spec=pltpu.PrefetchScalarGridSpec(
            num_scalar_prefetch=0,
            grid=(Bp // bt, nt),
            in_specs=[
                pl.BlockSpec((bt, 1), lambda b, c: (b, 0)),                # lengths
                pl.BlockSpec((chunk, bt, 3 * Hp), lambda b, c: (c, b, 0)), # gi chunk (bf16)
                pl.BlockSpec((Hp, 3 * Hp), lambda b, c: (0, 0)),           # W_hh^T (bf16)
                pl.BlockSpec((1, 3 * Hp), lambda b, c: (0, 0)),            # b_hh
            ],
            out_specs=pl.BlockSpec((chunk, bt, Hp), lambda b, c: (c, b, 0)),
            scratch_shapes=[pltpu.VMEM((bt, Hp), jnp.float32)],            # hidden carry
        ),
        compiler_params=pltpu.CompilerParams(
            dimension_semantics=("parallel", "arbitrary"),  # batch parallel, time sequential
            vmem_limit_bytes=int(vmem_cap * 0.85),
        ),
    )(Tp, gi, whh_p, bhh_p)

    # Hoisted output projection, time-major (no (Sp,Bp,Hp) transpose); only the tiny
    # (S, B, O) logits are transposed back to batch-first.
    h_valid = hseq[:S, :B, :H]                                           # (S, B, H)
    logits_sb = jnp.einsum("sbh,ho->sbo", h_valid, params["wout_t"],
                           preferred_element_type=jnp.float32) + params["bout"]
    return jnp.transpose(logits_sb, (1, 0, 2))                           # (B, S, O)


def init_params(key, in_dim, h_dim, out_dim):
    """Deterministic init mimicking PyTorch's uniform(-1/sqrt(H), 1/sqrt(H))."""
    ks = jax.random.split(key, 6)
    k_rnn = 1.0 / np.sqrt(h_dim)
    k_lin = 1.0 / np.sqrt(h_dim)
    u = lambda k, shape, b: jax.random.uniform(k, shape, jnp.float32, -b, b)
    return {
        "wih_t": u(ks[0], (in_dim, 3 * h_dim), k_rnn),   # = W_ih^T, W_ih is (3H, D)
        "whh_t": u(ks[1], (h_dim, 3 * h_dim), k_rnn),    # = W_hh^T, W_hh is (3H, H)
        "bih":   u(ks[2], (1, 3 * h_dim), k_rnn),
        "bhh":   u(ks[3], (1, 3 * h_dim), k_rnn),
        "wout_t": u(ks[4], (h_dim, out_dim), k_lin),     # = linear.weight^T
        "bout":   u(ks[5], (1, out_dim), k_lin),
    }


def reference_forward(X, T, p, padding_value):
    """Pure-JAX f32 reference (same math, plain loop) for correctness checking."""
    B, S, D = X.shape
    H = p["whh_t"].shape[0]
    h = jnp.zeros((B, H), jnp.float32)
    outs = []
    for t in range(S):
        x = X[:, t, :]
        gi = x @ p["wih_t"] + p["bih"]
        gh = h @ p["whh_t"] + p["bhh"]
        r = jax.nn.sigmoid(gi[:, :H] + gh[:, :H])
        z = jax.nn.sigmoid(gi[:, H:2 * H] + gh[:, H:2 * H])
        n = jnp.tanh(gi[:, 2 * H:] + r * gh[:, 2 * H:])
        h_new = (1.0 - z) * n + z * h
        mask = (t < T)[:, None]
        h = jnp.where(mask, h_new, h)
        h_out = jnp.where(mask, h_new, padding_value)
        outs.append(h_out @ p["wout_t"] + p["bout"])
    return jnp.stack(outs, axis=1)


if __name__ == "__main__":
    B, S, D, H, O = 4, 8, 4, 32, 4          # batch, max_seq_len, in_dim, h_dim, out_dim
    padding_value = -1.0

    key = jax.random.PRNGKey(0)
    k_x, k_p = jax.random.split(key)
    X = jax.random.normal(k_x, (B, S, D), jnp.float32)
    T = jnp.array([8, 5, 3, 6], jnp.int32)  # variable sequence lengths
    params = init_params(k_p, D, H, O)

    logits = general_rnn_forward(X, T, params, max_seq_len=S, padding_value=padding_value)
    logits = jax.block_until_ready(logits)

    # bf16 MXU operands (gi, h, W_hh) with f32 accumulation -> loosened tolerance vs f32 ref.
    ref = reference_forward(X, T, params, padding_value)
    np.testing.assert_allclose(np.asarray(logits), np.asarray(ref), rtol=2e-2, atol=2e-2)

    print("KERNEL_OK")
</pallas_src>

<mosaic_0001>
module attributes {stable_mosaic.version = 11 : i64} {
  func.func @_gru_chunk_kernel(%arg0: i32, %arg1: i32, %arg2: memref<8x1xi32, #tpu.memory_space<vmem>>, %arg3: memref<8x8x384xbf16, #tpu.memory_space<vmem>>, %arg4: memref<128x384xbf16, #tpu.memory_space<vmem>>, %arg5: memref<1x384xf32, #tpu.memory_space<vmem>>, %arg6: memref<8x8x128xf32, #tpu.memory_space<vmem>>, %arg7: memref<8x128xf32, #tpu.memory_space<vmem>>) attributes {dimension_semantics = [#tpu.dimension_semantics<parallel>, #tpu.dimension_semantics<arbitrary>], iteration_bounds = array<i64: 1, 1>, scalar_prefetch = 0 : i64, scratch_operands = 1 : i64, tpu.core_type = #tpu.core_type<tc>, window_params = [{transform_indices = @transform_0, window_bounds = array<i64: 8, 1>}, {transform_indices = @transform_1, window_bounds = array<i64: 8, 8, 384>}, {pipeline_mode = #tpu.pipeline_mode<synchronous>, transform_indices = @transform_2, window_bounds = array<i64: 128, 384>}, {pipeline_mode = #tpu.pipeline_mode<synchronous>, transform_indices = @transform_3, window_bounds = array<i64: 1, 384>}, {transform_indices = @transform_4, window_bounds = array<i64: 8, 8, 128>}]} {
    %c0_i32 = arith.constant 0 : i32
    %0 = arith.cmpi eq, %arg1, %c0_i32 : i32
    %1 = arith.extui %0 : i1 to i32
    %c0_i32_0 = arith.constant 0 : i32
    %2 = arith.cmpi ne, %1, %c0_i32_0 : i32
    scf.if %2 {
      %cst_83 = arith.constant 0.000000e+00 : f32
      %400 = vector.broadcast %cst_83 : f32 to vector<8x128xf32>
      %c0_84 = arith.constant 0 : index
      %c0_85 = arith.constant 0 : index
      %401 = vector.load %arg7[%c0_84, %c0_85] : memref<8x128xf32, #tpu.memory_space<vmem>>, vector<8x128xf32>
      tpu.vector_store %arg7[%c0_84, %c0_85], %400 {strides = array<i32>} : memref<8x128xf32, #tpu.memory_space<vmem>>, vector<8x128xf32>,
    } else {
    }
    %c0 = arith.constant 0 : index
    %c0_1 = arith.constant 0 : index
    %3 = vector.load %arg2[%c0, %c0_1] : memref<8x1xi32, #tpu.memory_space<vmem>>, vector<8x1xi32>
    %c0_2 = arith.constant 0 : index
    %c0_3 = arith.constant 0 : index
    %4 = vector.load %arg4[%c0_2, %c0_3] : memref<128x384xbf16, #tpu.memory_space<vmem>>, vector<128x384xbf16>
    %c0_4 = arith.constant 0 : index
    %c0_5 = arith.constant 0 : index
    %5 = vector.load %arg5[%c0_4, %c0_5] : memref<1x384xf32, #tpu.memory_space<vmem>>, vector<1x384xf32>
    %c0_6 = arith.constant 0 : index
    %c0_7 = arith.constant 0 : index
    %6 = vector.load %arg7[%c0_6, %c0_7] : memref<8x128xf32, #tpu.memory_space<vmem>>, vector<8x128xf32>
    %cst = arith.constant -1.000000e+00 : f32
    %c0_i32_8 = arith.constant 0 : i32
    %c8_i32 = arith.constant 8 : i32
    %7 = arith.muli %arg1, %c8_i32 : i32
    %8 = arith.addi %7, %c0_i32_8 : i32
    %9 = arith.truncf %6 : vector<8x128xf32> to vector<8x128xbf16>
    %cst_9 = arith.constant dense<0.000000e+00> : vector<8x384xf32>
    %10 = tpu.matmul %9, %4, %cst_9 {dimension_numbers = #tpu.dot_dimension_numbers<[1], [0], [0], [1], [0, 0, 1, 1], [], []>} : vector<8x128xbf16>, vector<128x384xbf16>, vector<8x384xf32> -> vector<8x384xf32>
    %11 = vector.broadcast %5 : vector<1x384xf32> to vector<8x384xf32>
    %12 = arith.addf %10, %11 : vector<8x384xf32>
    %13 = arith.index_cast %c0_i32_8 : i32 to index
    %c0_10 = arith.constant 0 : index
    %c0_11 = arith.constant 0 : index
    %14 = vector.load %arg3[%13, %c0_10, %c0_11] : memref<8x8x384xbf16, #tpu.memory_space<vmem>>, vector<1x8x384xbf16>
    %15 = vector.shape_cast %14 : vector<1x8x384xbf16> to vector<8x384xbf16>
    %16 = arith.extf %15 : vector<8x384xbf16> to vector<8x384xf32>
    %17 = vector.extract_strided_slice %16 {offsets = [0, 0], sizes = [8, 128], strides = [1, 1]} : vector<8x384xf32> to vector<8x128xf32>
    %18 = vector.extract_strided_slice %12 {offsets = [0, 0], sizes = [8, 128], strides = [1, 1]} : vector<8x384xf32> to vector<8x128xf32>
    %19 = arith.addf %17, %18 : vector<8x128xf32>
    %20 = arith.negf %19 : vector<8x128xf32>
    %21 = math.exp %20 : vector<8x128xf32>
    %cst_12 = arith.constant 1.000000e+00 : f32
    %22 = vector.broadcast %cst_12 : f32 to vector<8x128xf32>
    %23 = arith.addf %22, %21 : vector<8x128xf32>
    %24 = arith.divf %22, %23 : vector<8x128xf32>
    %25 = vector.extract_strided_slice %16 {offsets = [0, 128], sizes = [8, 128], strides = [1, 1]} : vector<8x384xf32> to vector<8x128xf32>
    %26 = vector.extract_strided_slice %12 {offsets = [0, 128], sizes = [8, 128], strides = [1, 1]} : vector<8x384xf32> to vector<8x128xf32>
    %27 = arith.addf %25, %26 : vector<8x128xf32>
    %28 = arith.negf %27 : vector<8x128xf32>
    %29 = math.exp %28 : vector<8x128xf32>
    %cst_13 = arith.constant 1.000000e+00 : f32
    %30 = vector.broadcast %cst_13 : f32 to vector<8x128xf32>
    %31 = arith.addf %30, %29 : vector<8x128xf32>
    %32 = arith.divf %30, %31 : vector<8x128xf32>
    %33 = vector.extract_strided_slice %16 {offsets = [0, 256], sizes = [8, 128], strides = [1, 1]} : vector<8x384xf32> to vector<8x128xf32>
    %34 = vector.extract_strided_slice %12 {offsets = [0, 256], sizes = [8, 128], strides = [1, 1]} : vector<8x384xf32> to vector<8x128xf32>
    %35 = arith.mulf %24, %34 : vector<8x128xf32>
    %36 = arith.addf %33, %35 : vector<8x128xf32>
    %37 = math.tanh %36 : vector<8x128xf32>
    %cst_14 = arith.constant 1.000000e+00 : f32
    %38 = vector.broadcast %cst_14 : f32 to vector<8x128xf32>
    %39 = arith.subf %38, %32 : vector<8x128xf32>
    %40 = arith.mulf %39, %37 : vector<8x128xf32>
    %41 = arith.mulf %32, %6 : vector<8x128xf32>
    %42 = arith.addf %40, %41 : vector<8x128xf32>
    %43 = vector.broadcast %8 : i32 to vector<8x1xi32>
    %44 = arith.cmpi slt, %43, %3 : vector<8x1xi32>
    %45 = vector.shape_cast %44 : vector<8x1xi1> to vector<8x1xi1>
    %46 = vector.broadcast %45 : vector<8x1xi1> to vector<8x128xi1>
    %47 = vector.broadcast %cst : f32 to vector<8x128xf32>
    %48 = arith.select %46, %42, %47 : vector<8x128xi1>, vector<8x128xf32>
    %49 = arith.index_cast %c0_i32_8 : i32 to index
    %c0_15 = arith.constant 0 : index
    %c0_16 = arith.constant 0 : index
    %50 = vector.load %arg6[%49, %c0_15, %c0_16] : memref<8x8x128xf32, #tpu.memory_space<vmem>>, vector<1x8x128xf32>
    %51 = vector.shape_cast %50 : vector<1x8x128xf32> to vector<8x128xf32>
    %52 = vector.shape_cast %48 : vector<8x128xf32> to vector<1x8x128xf32>
    tpu.vector_store %arg6[%49, %c0_15, %c0_16], %52 {strides = array<i32>} : memref<8x8x128xf32, #tpu.memory_space<vmem>>, vector<1x8x128xf32>,
    %53 = vector.shape_cast %44 : vector<8x1xi1> to vector<8x1xi1>
    %54 = vector.broadcast %53 : vector<8x1xi1> to vector<8x128xi1>
    %55 = arith.select %54, %42, %6 : vector<8x128xi1>, vector<8x128xf32>
    %c1_i32 = arith.constant 1 : i32
    %c8_i32_17 = arith.constant 8 : i32
    %56 = arith.muli %arg1, %c8_i32_17 : i32
    %57 = arith.addi %56, %c1_i32 : i32
    %58 = arith.truncf %55 : vector<8x128xf32> to vector<8x128xbf16>
    %cst_18 = arith.constant dense<0.000000e+00> : vector<8x384xf32>
    %59 = tpu.matmul %58, %4, %cst_18 {dimension_numbers = #tpu.dot_dimension_numbers<[1], [0], [0], [1], [0, 0, 1, 1], [], []>} : vector<8x128xbf16>, vector<128x384xbf16>, vector<8x384xf32> -> vector<8x384xf32>
    %60 = vector.broadcast %5 : vector<1x384xf32> to vector<8x384xf32>
    %61 = arith.addf %59, %60 : vector<8x384xf32>
    %62 = arith.index_cast %c1_i32 : i32 to index
    %c0_19 = arith.constant 0 : index
    %c0_20 = arith.constant 0 : index
    %63 = vector.load %arg3[%62, %c0_19, %c0_20] : memref<8x8x384xbf16, #tpu.memory_space<vmem>>, vector<1x8x384xbf16>
    %64 = vector.shape_cast %63 : vector<1x8x384xbf16> to vector<8x384xbf16>
    %65 = arith.extf %64 : vector<8x384xbf16> to vector<8x384xf32>
    %66 = vector.extract_strided_slice %65 {offsets = [0, 0], sizes = [8, 128], strides = [1, 1]} : vector<8x384xf32> to vector<8x128xf32>
    %67 = vector.extract_strided_slice %61 {offsets = [0, 0], sizes = [8, 128], strides = [1, 1]} : vector<8x384xf32> to vector<8x128xf32>
    %68 = arith.addf %66, %67 : vector<8x128xf32>
    %69 = arith.negf %68 : vector<8x128xf32>
    %70 = math.exp %69 : vector<8x128xf32>
    %cst_21 = arith.constant 1.000000e+00 : f32
    %71 = vector.broadcast %cst_21 : f32 to vector<8x128xf32>
    %72 = arith.addf %71, %70 : vector<8x128xf32>
    %73 = arith.divf %71, %72 : vector<8x128xf32>
    %74 = vector.extract_strided_slice %65 {offsets = [0, 128], sizes = [8, 128], strides = [1, 1]} : vector<8x384xf32> to vector<8x128xf32>
    %75 = vector.extract_strided_slice %61 {offsets = [0, 128], sizes = [8, 128], strides = [1, 1]} : vector<8x384xf32> to vector<8x128xf32>
    %76 = arith.addf %74, %75 : vector<8x128xf32>
    %77 = arith.negf %76 : vector<8x128xf32>
    %78 = math.exp %77 : vector<8x128xf32>
    %cst_22 = arith.constant 1.000000e+00 : f32
    %79 = vector.broadcast %cst_22 : f32 to vector<8x128xf32>
    %80 = arith.addf %79, %78 : vector<8x128xf32>
    %81 = arith.divf %79, %80 : vector<8x128xf32>
    %82 = vector.extract_strided_slice %65 {offsets = [0, 256], sizes = [8, 128], strides = [1, 1]} : vector<8x384xf32> to vector<8x128xf32>
    %83 = vector.extract_strided_slice %61 {offsets = [0, 256], sizes = [8, 128], strides = [1, 1]} : vector<8x384xf32> to vector<8x128xf32>
    %84 = arith.mulf %73, %83 : vector<8x128xf32>
    %85 = arith.addf %82, %84 : vector<8x128xf32>
    %86 = math.tanh %85 : vector<8x128xf32>
    %cst_23 = arith.constant 1.000000e+00 : f32
    %87 = vector.broadcast %cst_23 : f32 to vector<8x128xf32>
    %88 = arith.subf %87, %81 : vector<8x128xf32>
    %89 = arith.mulf %88, %86 : vector<8x128xf32>
    %90 = arith.mulf %81, %55 : vector<8x128xf32>
    %91 = arith.addf %89, %90 : vector<8x128xf32>
    %92 = vector.broadcast %57 : i32 to vector<8x1xi32>
    %93 = arith.cmpi slt, %92, %3 : vector<8x1xi32>
    %94 = vector.shape_cast %93 : vector<8x1xi1> to vector<8x1xi1>
    %95 = vector.broadcast %94 : vector<8x1xi1> to vector<8x128xi1>
    %96 = vector.broadcast %cst : f32 to vector<8x128xf32>
    %97 = arith.select %95, %91, %96 : vector<8x128xi1>, vector<8x128xf32>
    %98 = arith.index_cast %c1_i32 : i32 to index
    %c0_24 = arith.constant 0 : index
    %c0_25 = arith.constant 0 : index
    %99 = vector.load %arg6[%98, %c0_24, %c0_25] : memref<8x8x128xf32, #tpu.memory_space<vmem>>, vector<1x8x128xf32>
    %100 = vector.shape_cast %99 : vector<1x8x128xf32> to vector<8x128xf32>
    %101 = vector.shape_cast %97 : vector<8x128xf32> to vector<1x8x128xf32>
    tpu.vector_store %arg6[%98, %c0_24, %c0_25], %101 {strides = array<i32>} : memref<8x8x128xf32, #tpu.memory_space<vmem>>, vector<1x8x128xf32>,
    %102 = vector.shape_cast %93 : vector<8x1xi1> to vector<8x1xi1>
    %103 = vector.broadcast %102 : vector<8x1xi1> to vector<8x128xi1>
    %104 = arith.select %103, %91, %55 : vector<8x128xi1>, vector<8x128xf32>
    %c2_i32 = arith.constant 2 : i32
    %c8_i32_26 = arith.constant 8 : i32
    %105 = arith.muli %arg1, %c8_i32_26 : i32
    %106 = arith.addi %105, %c2_i32 : i32
    %107 = arith.truncf %104 : vector<8x128xf32> to vector<8x128xbf16>
    %cst_27 = arith.constant dense<0.000000e+00> : vector<8x384xf32>
    %108 = tpu.matmul %107, %4, %cst_27 {dimension_numbers = #tpu.dot_dimension_numbers<[1], [0], [0], [1], [0, 0, 1, 1], [], []>} : vector<8x128xbf16>, vector<128x384xbf16>, vector<8x384xf32> -> vector<8x384xf32>
    %109 = vector.broadcast %5 : vector<1x384xf32> to vector<8x384xf32>
    %110 = arith.addf %108, %109 : vector<8x384xf32>
    %111 = arith.index_cast %c2_i32 : i32 to index
    %c0_28 = arith.constant 0 : index
    %c0_29 = arith.constant 0 : index
    %112 = vector.load %arg3[%111, %c0_28, %c0_29] : memref<8x8x384xbf16, #tpu.memory_space<vmem>>, vector<1x8x384xbf16>
    %113 = vector.shape_cast %112 : vector<1x8x384xbf16> to vector<8x384xbf16>
    %114 = arith.extf %113 : vector<8x384xbf16> to vector<8x384xf32>
    %115 = vector.extract_strided_slice %114 {offsets = [0, 0], sizes = [8, 128], strides = [1, 1]} : vector<8x384xf32> to vector<8x128xf32>
    %116 = vector.extract_strided_slice %110 {offsets = [0, 0], sizes = [8, 128], strides = [1, 1]} : vector<8x384xf32> to vector<8x128xf32>
    %117 = arith.addf %115, %116 : vector<8x128xf32>
    %118 = arith.negf %117 : vector<8x128xf32>
    %119 = math.exp %118 : vector<8x128xf32>
    %cst_30 = arith.constant 1.000000e+00 : f32
    %120 = vector.broadcast %cst_30 : f32 to vector<8x128xf32>
    %121 = arith.addf %120, %119 : vector<8x128xf32>
    %122 = arith.divf %120, %121 : vector<8x128xf32>
    %123 = vector.extract_strided_slice %114 {offsets = [0, 128], sizes = [8, 128], strides = [1, 1]} : vector<8x384xf32> to vector<8x128xf32>
    %124 = vector.extract_strided_slice %110 {offsets = [0, 128], sizes = [8, 128], strides = [1, 1]} : vector<8x384xf32> to vector<8x128xf32>
    %125 = arith.addf %123, %124 : vector<8x128xf32>
    %126 = arith.negf %125 : vector<8x128xf32>
    %127 = math.exp %126 : vector<8x128xf32>
    %cst_31 = arith.constant 1.000000e+00 : f32
    %128 = vector.broadcast %cst_31 : f32 to vector<8x128xf32>
    %129 = arith.addf %128, %127 : vector<8x128xf32>
    %130 = arith.divf %128, %129 : vector<8x128xf32>
    %131 = vector.extract_strided_slice %114 {offsets = [0, 256], sizes = [8, 128], strides = [1, 1]} : vector<8x384xf32> to vector<8x128xf32>
    %132 = vector.extract_strided_slice %110 {offsets = [0, 256], sizes = [8, 128], strides = [1, 1]} : vector<8x384xf32> to vector<8x128xf32>
    %133 = arith.mulf %122, %132 : vector<8x128xf32>
    %134 = arith.addf %131, %133 : vector<8x128xf32>
    %135 = math.tanh %134 : vector<8x128xf32>
    %cst_32 = arith.constant 1.000000e+00 : f32
    %136 = vector.broadcast %cst_32 : f32 to vector<8x128xf32>
    %137 = arith.subf %136, %130 : vector<8x128xf32>
    %138 = arith.mulf %137, %135 : vector<8x128xf32>
    %139 = arith.mulf %130, %104 : vector<8x128xf32>
    %140 = arith.addf %138, %139 : vector<8x128xf32>
    %141 = vector.broadcast %106 : i32 to vector<8x1xi32>
    %142 = arith.cmpi slt, %141, %3 : vector<8x1xi32>
    %143 = vector.shape_cast %142 : vector<8x1xi1> to vector<8x1xi1>
    %144 = vector.broadcast %143 : vector<8x1xi1> to vector<8x128xi1>
    %145 = vector.broadcast %cst : f32 to vector<8x128xf32>
    %146 = arith.select %144, %140, %145 : vector<8x128xi1>, vector<8x128xf32>
    %147 = arith.index_cast %c2_i32 : i32 to index
    %c0_33 = arith.constant 0 : index
    %c0_34 = arith.constant 0 : index
    %148 = vector.load %arg6[%147, %c0_33, %c0_34] : memref<8x8x128xf32, #tpu.memory_space<vmem>>, vector<1x8x128xf32>
    %149 = vector.shape_cast %148 : vector<1x8x128xf32> to vector<8x128xf32>
    %150 = vector.shape_cast %146 : vector<8x128xf32> to vector<1x8x128xf32>
    tpu.vector_store %arg6[%147, %c0_33, %c0_34], %150 {strides = array<i32>} : memref<8x8x128xf32, #tpu.memory_space<vmem>>, vector<1x8x128xf32>,
    %151 = vector.shape_cast %142 : vector<8x1xi1> to vector<8x1xi1>
    %152 = vector.broadcast %151 : vector<8x1xi1> to vector<8x128xi1>
    %153 = arith.select %152, %140, %104 : vector<8x128xi1>, vector<8x128xf32>
    %c3_i32 = arith.constant 3 : i32
    %c8_i32_35 = arith.constant 8 : i32
    %154 = arith.muli %arg1, %c8_i32_35 : i32
    %155 = arith.addi %154, %c3_i32 : i32
    %156 = arith.truncf %153 : vector<8x128xf32> to vector<8x128xbf16>
    %cst_36 = arith.constant dense<0.000000e+00> : vector<8x384xf32>
    %157 = tpu.matmul %156, %4, %cst_36 {dimension_numbers = #tpu.dot_dimension_numbers<[1], [0], [0], [1], [0, 0, 1, 1], [], []>} : vector<8x128xbf16>, vector<128x384xbf16>, vector<8x384xf32> -> vector<8x384xf32>
    %158 = vector.broadcast %5 : vector<1x384xf32> to vector<8x384xf32>
    %159 = arith.addf %157, %158 : vector<8x384xf32>
    %160 = arith.index_cast %c3_i32 : i32 to index
    %c0_37 = arith.constant 0 : index
    %c0_38 = arith.constant 0 : index
    %161 = vector.load %arg3[%160, %c0_37, %c0_38] : memref<8x8x384xbf16, #tpu.memory_space<vmem>>, vector<1x8x384xbf16>
    %162 = vector.shape_cast %161 : vector<1x8x384xbf16> to vector<8x384xbf16>
    %163 = arith.extf %162 : vector<8x384xbf16> to vector<8x384xf32>
    %164 = vector.extract_strided_slice %163 {offsets = [0, 0], sizes = [8, 128], strides = [1, 1]} : vector<8x384xf32> to vector<8x128xf32>
    %165 = vector.extract_strided_slice %159 {offsets = [0, 0], sizes = [8, 128], strides = [1, 1]} : vector<8x384xf32> to vector<8x128xf32>
    %166 = arith.addf %164, %165 : vector<8x128xf32>
    %167 = arith.negf %166 : vector<8x128xf32>
    %168 = math.exp %167 : vector<8x128xf32>
    %cst_39 = arith.constant 1.000000e+00 : f32
    %169 = vector.broadcast %cst_39 : f32 to vector<8x128xf32>
    %170 = arith.addf %169, %168 : vector<8x128xf32>
    %171 = arith.divf %169, %170 : vector<8x128xf32>
    %172 = vector.extract_strided_slice %163 {offsets = [0, 128], sizes = [8, 128], strides = [1, 1]} : vector<8x384xf32> to vector<8x128xf32>
    %173 = vector.extract_strided_slice %159 {offsets = [0, 128], sizes = [8, 128], strides = [1, 1]} : vector<8x384xf32> to vector<8x128xf32>
    %174 = arith.addf %172, %173 : vector<8x128xf32>
    %175 = arith.negf %174 : vector<8x128xf32>
    %176 = math.exp %175 : vector<8x128xf32>
    %cst_40 = arith.constant 1.000000e+00 : f32
    %177 = vector.broadcast %cst_40 : f32 to vector<8x128xf32>
    %178 = arith.addf %177, %176 : vector<8x128xf32>
    %179 = arith.divf %177, %178 : vector<8x128xf32>
    %180 = vector.extract_strided_slice %163 {offsets = [0, 256], sizes = [8, 128], strides = [1, 1]} : vector<8x384xf32> to vector<8x128xf32>
    %181 = vector.extract_strided_slice %159 {offsets = [0, 256], sizes = [8, 128], strides = [1, 1]} : vector<8x384xf32> to vector<8x128xf32>
    %182 = arith.mulf %171, %181 : vector<8x128xf32>
    %183 = arith.addf %180, %182 : vector<8x128xf32>
    %184 = math.tanh %183 : vector<8x128xf32>
    %cst_41 = arith.constant 1.000000e+00 : f32
    %185 = vector.broadcast %cst_41 : f32 to vector<8x128xf32>
    %186 = arith.subf %185, %179 : vector<8x128xf32>
    %187 = arith.mulf %186, %184 : vector<8x128xf32>
    %188 = arith.mulf %179, %153 : vector<8x128xf32>
    %189 = arith.addf %187, %188 : vector<8x128xf32>
    %190 = vector.broadcast %155 : i32 to vector<8x1xi32>
    %191 = arith.cmpi slt, %190, %3 : vector<8x1xi32>
    %192 = vector.shape_cast %191 : vector<8x1xi1> to vector<8x1xi1>
    %193 = vector.broadcast %192 : vector<8x1xi1> to vector<8x128xi1>
    %194 = vector.broadcast %cst : f32 to vector<8x128xf32>
    %195 = arith.select %193, %189, %194 : vector<8x128xi1>, vector<8x128xf32>
    %196 = arith.index_cast %c3_i32 : i32 to index
    %c0_42 = arith.constant 0 : index
    %c0_43 = arith.constant 0 : index
    %197 = vector.load %arg6[%196, %c0_42, %c0_43] : memref<8x8x128xf32, #tpu.memory_space<vmem>>, vector<1x8x128xf32>
    %198 = vector.shape_cast %197 : vector<1x8x128xf32> to vector<8x128xf32>
    %199 = vector.shape_cast %195 : vector<8x128xf32> to vector<1x8x128xf32>
    tpu.vector_store %arg6[%196, %c0_42, %c0_43], %199 {strides = array<i32>} : memref<8x8x128xf32, #tpu.memory_space<vmem>>, vector<1x8x128xf32>,
    %200 = vector.shape_cast %191 : vector<8x1xi1> to vector<8x1xi1>
    %201 = vector.broadcast %200 : vector<8x1xi1> to vector<8x128xi1>
    %202 = arith.select %201, %189, %153 : vector<8x128xi1>, vector<8x128xf32>
    %c4_i32 = arith.constant 4 : i32
    %c8_i32_44 = arith.constant 8 : i32
    %203 = arith.muli %arg1, %c8_i32_44 : i32
    %204 = arith.addi %203, %c4_i32 : i32
    %205 = arith.truncf %202 : vector<8x128xf32> to vector<8x128xbf16>
    %cst_45 = arith.constant dense<0.000000e+00> : vector<8x384xf32>
    %206 = tpu.matmul %205, %4, %cst_45 {dimension_numbers = #tpu.dot_dimension_numbers<[1], [0], [0], [1], [0, 0, 1, 1], [], []>} : vector<8x128xbf16>, vector<128x384xbf16>, vector<8x384xf32> -> vector<8x384xf32>
    %207 = vector.broadcast %5 : vector<1x384xf32> to vector<8x384xf32>
    %208 = arith.addf %206, %207 : vector<8x384xf32>
    %209 = arith.index_cast %c4_i32 : i32 to index
    %c0_46 = arith.constant 0 : index
    %c0_47 = arith.constant 0 : index
    %210 = vector.load %arg3[%209, %c0_46, %c0_47] : memref<8x8x384xbf16, #tpu.memory_space<vmem>>, vector<1x8x384xbf16>
    %211 = vector.shape_cast %210 : vector<1x8x384xbf16> to vector<8x384xbf16>
    %212 = arith.extf %211 : vector<8x384xbf16> to vector<8x384xf32>
    %213 = vector.extract_strided_slice %212 {offsets = [0, 0], sizes = [8, 128], strides = [1, 1]} : vector<8x384xf32> to vector<8x128xf32>
    %214 = vector.extract_strided_slice %208 {offsets = [0, 0], sizes = [8, 128], strides = [1, 1]} : vector<8x384xf32> to vector<8x128xf32>
    %215 = arith.addf %213, %214 : vector<8x128xf32>
    %216 = arith.negf %215 : vector<8x128xf32>
    %217 = math.exp %216 : vector<8x128xf32>
    %cst_48 = arith.constant 1.000000e+00 : f32
    %218 = vector.broadcast %cst_48 : f32 to vector<8x128xf32>
    %219 = arith.addf %218, %217 : vector<8x128xf32>
    %220 = arith.divf %218, %219 : vector<8x128xf32>
    %221 = vector.extract_strided_slice %212 {offsets = [0, 128], sizes = [8, 128], strides = [1, 1]} : vector<8x384xf32> to vector<8x128xf32>
    %222 = vector.extract_strided_slice %208 {offsets = [0, 128], sizes = [8, 128], strides = [1, 1]} : vector<8x384xf32> to vector<8x128xf32>
    %223 = arith.addf %221, %222 : vector<8x128xf32>
    %224 = arith.negf %223 : vector<8x128xf32>
    %225 = math.exp %224 : vector<8x128xf32>
    %cst_49 = arith.constant 1.000000e+00 : f32
    %226 = vector.broadcast %cst_49 : f32 to vector<8x128xf32>
    %227 = arith.addf %226, %225 : vector<8x128xf32>
    %228 = arith.divf %226, %227 : vector<8x128xf32>
    %229 = vector.extract_strided_slice %212 {offsets = [0, 256], sizes = [8, 128], strides = [1, 1]} : vector<8x384xf32> to vector<8x128xf32>
    %230 = vector.extract_strided_slice %208 {offsets = [0, 256], sizes = [8, 128], strides = [1, 1]} : vector<8x384xf32> to vector<8x128xf32>
    %231 = arith.mulf %220, %230 : vector<8x128xf32>
    %232 = arith.addf %229, %231 : vector<8x128xf32>
    %233 = math.tanh %232 : vector<8x128xf32>
    %cst_50 = arith.constant 1.000000e+00 : f32
    %234 = vector.broadcast %cst_50 : f32 to vector<8x128xf32>
    %235 = arith.subf %234, %228 : vector<8x128xf32>
    %236 = arith.mulf %235, %233 : vector<8x128xf32>
    %237 = arith.mulf %228, %202 : vector<8x128xf32>
    %238 = arith.addf %236, %237 : vector<8x128xf32>
    %239 = vector.broadcast %204 : i32 to vector<8x1xi32>
    %240 = arith.cmpi slt, %239, %3 : vector<8x1xi32>
    %241 = vector.shape_cast %240 : vector<8x1xi1> to vector<8x1xi1>
    %242 = vector.broadcast %241 : vector<8x1xi1> to vector<8x128xi1>
    %243 = vector.broadcast %cst : f32 to vector<8x128xf32>
    %244 = arith.select %242, %238, %243 : vector<8x128xi1>, vector<8x128xf32>
    %245 = arith.index_cast %c4_i32 : i32 to index
    %c0_51 = arith.constant 0 : index
    %c0_52 = arith.constant 0 : index
    %246 = vector.load %arg6[%245, %c0_51, %c0_52] : memref<8x8x128xf32, #tpu.memory_space<vmem>>, vector<1x8x128xf32>
    %247 = vector.shape_cast %246 : vector<1x8x128xf32> to vector<8x128xf32>
    %248 = vector.shape_cast %244 : vector<8x128xf32> to vector<1x8x128xf32>
    tpu.vector_store %arg6[%245, %c0_51, %c0_52], %248 {strides = array<i32>} : memref<8x8x128xf32, #tpu.memory_space<vmem>>, vector<1x8x128xf32>,
    %249 = vector.shape_cast %240 : vector<8x1xi1> to vector<8x1xi1>
    %250 = vector.broadcast %249 : vector<8x1xi1> to vector<8x128xi1>
    %251 = arith.select %250, %238, %202 : vector<8x128xi1>, vector<8x128xf32>
    %c5_i32 = arith.constant 5 : i32
    %c8_i32_53 = arith.constant 8 : i32
    %252 = arith.muli %arg1, %c8_i32_53 : i32
    %253 = arith.addi %252, %c5_i32 : i32
    %254 = arith.truncf %251 : vector<8x128xf32> to vector<8x128xbf16>
    %cst_54 = arith.constant dense<0.000000e+00> : vector<8x384xf32>
    %255 = tpu.matmul %254, %4, %cst_54 {dimension_numbers = #tpu.dot_dimension_numbers<[1], [0], [0], [1], [0, 0, 1, 1], [], []>} : vector<8x128xbf16>, vector<128x384xbf16>, vector<8x384xf32> -> vector<8x384xf32>
    %256 = vector.broadcast %5 : vector<1x384xf32> to vector<8x384xf32>
    %257 = arith.addf %255, %256 : vector<8x384xf32>
    %258 = arith.index_cast %c5_i32 : i32 to index
    %c0_55 = arith.constant 0 : index
    %c0_56 = arith.constant 0 : index
    %259 = vector.load %arg3[%258, %c0_55, %c0_56] : memref<8x8x384xbf16, #tpu.memory_space<vmem>>, vector<1x8x384xbf16>
    %260 = vector.shape_cast %259 : vector<1x8x384xbf16> to vector<8x384xbf16>
    %261 = arith.extf %260 : vector<8x384xbf16> to vector<8x384xf32>
    %262 = vector.extract_strided_slice %261 {offsets = [0, 0], sizes = [8, 128], strides = [1, 1]} : vector<8x384xf32> to vector<8x128xf32>
    %263 = vector.extract_strided_slice %257 {offsets = [0, 0], sizes = [8, 128], strides = [1, 1]} : vector<8x384xf32> to vector<8x128xf32>
    %264 = arith.addf %262, %263 : vector<8x128xf32>
    %265 = arith.negf %264 : vector<8x128xf32>
    %266 = math.exp %265 : vector<8x128xf32>
    %cst_57 = arith.constant 1.000000e+00 : f32
    %267 = vector.broadcast %cst_57 : f32 to vector<8x128xf32>
    %268 = arith.addf %267, %266 : vector<8x128xf32>
    %269 = arith.divf %267, %268 : vector<8x128xf32>
    %270 = vector.extract_strided_slice %261 {offsets = [0, 128], sizes = [8, 128], strides = [1, 1]} : vector<8x384xf32> to vector<8x128xf32>
    %271 = vector.extract_strided_slice %257 {offsets = [0, 128], sizes = [8, 128], strides = [1, 1]} : vector<8x384xf32> to vector<8x128xf32>
    %272 = arith.addf %270, %271 : vector<8x128xf32>
    %273 = arith.negf %272 : vector<8x128xf32>
    %274 = math.exp %273 : vector<8x128xf32>
    %cst_58 = arith.constant 1.000000e+00 : f32
    %275 = vector.broadcast %cst_58 : f32 to vector<8x128xf32>
    %276 = arith.addf %275, %274 : vector<8x128xf32>
    %277 = arith.divf %275, %276 : vector<8x128xf32>
    %278 = vector.extract_strided_slice %261 {offsets = [0, 256], sizes = [8, 128], strides = [1, 1]} : vector<8x384xf32> to vector<8x128xf32>
    %279 = vector.extract_strided_slice %257 {offsets = [0, 256], sizes = [8, 128], strides = [1, 1]} : vector<8x384xf32> to vector<8x128xf32>
    %280 = arith.mulf %269, %279 : vector<8x128xf32>
    %281 = arith.addf %278, %280 : vector<8x128xf32>
    %282 = math.tanh %281 : vector<8x128xf32>
    %cst_59 = arith.constant 1.000000e+00 : f32
    %283 = vector.broadcast %cst_59 : f32 to vector<8x128xf32>
    %284 = arith.subf %283, %277 : vector<8x128xf32>
    %285 = arith.mulf %284, %282 : vector<8x128xf32>
    %286 = arith.mulf %277, %251 : vector<8x128xf32>
    %287 = arith.addf %285, %286 : vector<8x128xf32>
    %288 = vector.broadcast %253 : i32 to vector<8x1xi32>
    %289 = arith.cmpi slt, %288, %3 : vector<8x1xi32>
    %290 = vector.shape_cast %289 : vector<8x1xi1> to vector<8x1xi1>
    %291 = vector.broadcast %290 : vector<8x1xi1> to vector<8x128xi1>
    %292 = vector.broadcast %cst : f32 to vector<8x128xf32>
    %293 = arith.select %291, %287, %292 : vector<8x128xi1>, vector<8x128xf32>
    %294 = arith.index_cast %c5_i32 : i32 to index
    %c0_60 = arith.constant 0 : index
    %c0_61 = arith.constant 0 : index
    %295 = vector.load %arg6[%294, %c0_60, %c0_61] : memref<8x8x128xf32, #tpu.memory_space<vmem>>, vector<1x8x128xf32>
    %296 = vector.shape_cast %295 : vector<1x8x128xf32> to vector<8x128xf32>
    %297 = vector.shape_cast %293 : vector<8x128xf32> to vector<1x8x128xf32>
    tpu.vector_store %arg6[%294, %c0_60, %c0_61], %297 {strides = array<i32>} : memref<8x8x128xf32, #tpu.memory_space<vmem>>, vector<1x8x128xf32>,
    %298 = vector.shape_cast %289 : vector<8x1xi1> to vector<8x1xi1>
    %299 = vector.broadcast %298 : vector<8x1xi1> to vector<8x128xi1>
    %300 = arith.select %299, %287, %251 : vector<8x128xi1>, vector<8x128xf32>
    %c6_i32 = arith.constant 6 : i32
    %c8_i32_62 = arith.constant 8 : i32
    %301 = arith.muli %arg1, %c8_i32_62 : i32
    %302 = arith.addi %301, %c6_i32 : i32
    %303 = arith.truncf %300 : vector<8x128xf32> to vector<8x128xbf16>
    %cst_63 = arith.constant dense<0.000000e+00> : vector<8x384xf32>
    %304 = tpu.matmul %303, %4, %cst_63 {dimension_numbers = #tpu.dot_dimension_numbers<[1], [0], [0], [1], [0, 0, 1, 1], [], []>} : vector<8x128xbf16>, vector<128x384xbf16>, vector<8x384xf32> -> vector<8x384xf32>
    %305 = vector.broadcast %5 : vector<1x384xf32> to vector<8x384xf32>
    %306 = arith.addf %304, %305 : vector<8x384xf32>
    %307 = arith.index_cast %c6_i32 : i32 to index
    %c0_64 = arith.constant 0 : index
    %c0_65 = arith.constant 0 : index
    %308 = vector.load %arg3[%307, %c0_64, %c0_65] : memref<8x8x384xbf16, #tpu.memory_space<vmem>>, vector<1x8x384xbf16>
    %309 = vector.shape_cast %308 : vector<1x8x384xbf16> to vector<8x384xbf16>
    %310 = arith.extf %309 : vector<8x384xbf16> to vector<8x384xf32>
    %311 = vector.extract_strided_slice %310 {offsets = [0, 0], sizes = [8, 128], strides = [1, 1]} : vector<8x384xf32> to vector<8x128xf32>
    %312 = vector.extract_strided_slice %306 {offsets = [0, 0], sizes = [8, 128], strides = [1, 1]} : vector<8x384xf32> to vector<8x128xf32>
    %313 = arith.addf %311, %312 : vector<8x128xf32>
    %314 = arith.negf %313 : vector<8x128xf32>
    %315 = math.exp %314 : vector<8x128xf32>
    %cst_66 = arith.constant 1.000000e+00 : f32
    %316 = vector.broadcast %cst_66 : f32 to vector<8x128xf32>
    %317 = arith.addf %316, %315 : vector<8x128xf32>
    %318 = arith.divf %316, %317 : vector<8x128xf32>
    %319 = vector.extract_strided_slice %310 {offsets = [0, 128], sizes = [8, 128], strides = [1, 1]} : vector<8x384xf32> to vector<8x128xf32>
    %320 = vector.extract_strided_slice %306 {offsets = [0, 128], sizes = [8, 128], strides = [1, 1]} : vector<8x384xf32> to vector<8x128xf32>
    %321 = arith.addf %319, %320 : vector<8x128xf32>
    %322 = arith.negf %321 : vector<8x128xf32>
    %323 = math.exp %322 : vector<8x128xf32>
    %cst_67 = arith.constant 1.000000e+00 : f32
    %324 = vector.broadcast %cst_67 : f32 to vector<8x128xf32>
    %325 = arith.addf %324, %323 : vector<8x128xf32>
    %326 = arith.divf %324, %325 : vector<8x128xf32>
    %327 = vector.extract_strided_slice %310 {offsets = [0, 256], sizes = [8, 128], strides = [1, 1]} : vector<8x384xf32> to vector<8x128xf32>
    %328 = vector.extract_strided_slice %306 {offsets = [0, 256], sizes = [8, 128], strides = [1, 1]} : vector<8x384xf32> to vector<8x128xf32>
    %329 = arith.mulf %318, %328 : vector<8x128xf32>
    %330 = arith.addf %327, %329 : vector<8x128xf32>
    %331 = math.tanh %330 : vector<8x128xf32>
    %cst_68 = arith.constant 1.000000e+00 : f32
    %332 = vector.broadcast %cst_68 : f32 to vector<8x128xf32>
    %333 = arith.subf %332, %326 : vector<8x128xf32>
    %334 = arith.mulf %333, %331 : vector<8x128xf32>
    %335 = arith.mulf %326, %300 : vector<8x128xf32>
    %336 = arith.addf %334, %335 : vector<8x128xf32>
    %337 = vector.broadcast %302 : i32 to vector<8x1xi32>
    %338 = arith.cmpi slt, %337, %3 : vector<8x1xi32>
    %339 = vector.shape_cast %338 : vector<8x1xi1> to vector<8x1xi1>
    %340 = vector.broadcast %339 : vector<8x1xi1> to vector<8x128xi1>
    %341 = vector.broadcast %cst : f32 to vector<8x128xf32>
    %342 = arith.select %340, %336, %341 : vector<8x128xi1>, vector<8x128xf32>
    %343 = arith.index_cast %c6_i32 : i32 to index
    %c0_69 = arith.constant 0 : index
    %c0_70 = arith.constant 0 : index
    %344 = vector.load %arg6[%343, %c0_69, %c0_70] : memref<8x8x128xf32, #tpu.memory_space<vmem>>, vector<1x8x128xf32>
    %345 = vector.shape_cast %344 : vector<1x8x128xf32> to vector<8x128xf32>
    %346 = vector.shape_cast %342 : vector<8x128xf32> to vector<1x8x128xf32>
    tpu.vector_store %arg6[%343, %c0_69, %c0_70], %346 {strides = array<i32>} : memref<8x8x128xf32, #tpu.memory_space<vmem>>, vector<1x8x128xf32>,
    %347 = vector.shape_cast %338 : vector<8x1xi1> to vector<8x1xi1>
    %348 = vector.broadcast %347 : vector<8x1xi1> to vector<8x128xi1>
    %349 = arith.select %348, %336, %300 : vector<8x128xi1>, vector<8x128xf32>
    %c7_i32 = arith.constant 7 : i32
    %c8_i32_71 = arith.constant 8 : i32
    %350 = arith.muli %arg1, %c8_i32_71 : i32
    %351 = arith.addi %350, %c7_i32 : i32
    %352 = arith.truncf %349 : vector<8x128xf32> to vector<8x128xbf16>
    %cst_72 = arith.constant dense<0.000000e+00> : vector<8x384xf32>
    %353 = tpu.matmul %352, %4, %cst_72 {dimension_numbers = #tpu.dot_dimension_numbers<[1], [0], [0], [1], [0, 0, 1, 1], [], []>} : vector<8x128xbf16>, vector<128x384xbf16>, vector<8x384xf32> -> vector<8x384xf32>
    %354 = vector.broadcast %5 : vector<1x384xf32> to vector<8x384xf32>
    %355 = arith.addf %353, %354 : vector<8x384xf32>
    %356 = arith.index_cast %c7_i32 : i32 to index
    %c0_73 = arith.constant 0 : index
    %c0_74 = arith.constant 0 : index
    %357 = vector.load %arg3[%356, %c0_73, %c0_74] : memref<8x8x384xbf16, #tpu.memory_space<vmem>>, vector<1x8x384xbf16>
    %358 = vector.shape_cast %357 : vector<1x8x384xbf16> to vector<8x384xbf16>
    %359 = arith.extf %358 : vector<8x384xbf16> to vector<8x384xf32>
    %360 = vector.extract_strided_slice %359 {offsets = [0, 0], sizes = [8, 128], strides = [1, 1]} : vector<8x384xf32> to vector<8x128xf32>
    %361 = vector.extract_strided_slice %355 {offsets = [0, 0], sizes = [8, 128], strides = [1, 1]} : vector<8x384xf32> to vector<8x128xf32>
    %362 = arith.addf %360, %361 : vector<8x128xf32>
    %363 = arith.negf %362 : vector<8x128xf32>
    %364 = math.exp %363 : vector<8x128xf32>
    %cst_75 = arith.constant 1.000000e+00 : f32
    %365 = vector.broadcast %cst_75 : f32 to vector<8x128xf32>
    %366 = arith.addf %365, %364 : vector<8x128xf32>
    %367 = arith.divf %365, %366 : vector<8x128xf32>
    %368 = vector.extract_strided_slice %359 {offsets = [0, 128], sizes = [8, 128], strides = [1, 1]} : vector<8x384xf32> to vector<8x128xf32>
    %369 = vector.extract_strided_slice %355 {offsets = [0, 128], sizes = [8, 128], strides = [1, 1]} : vector<8x384xf32> to vector<8x128xf32>
    %370 = arith.addf %368, %369 : vector<8x128xf32>
    %371 = arith.negf %370 : vector<8x128xf32>
    %372 = math.exp %371 : vector<8x128xf32>
    %cst_76 = arith.constant 1.000000e+00 : f32
    %373 = vector.broadcast %cst_76 : f32 to vector<8x128xf32>
    %374 = arith.addf %373, %372 : vector<8x128xf32>
    %375 = arith.divf %373, %374 : vector<8x128xf32>
    %376 = vector.extract_strided_slice %359 {offsets = [0, 256], sizes = [8, 128], strides = [1, 1]} : vector<8x384xf32> to vector<8x128xf32>
    %377 = vector.extract_strided_slice %355 {offsets = [0, 256], sizes = [8, 128], strides = [1, 1]} : vector<8x384xf32> to vector<8x128xf32>
    %378 = arith.mulf %367, %377 : vector<8x128xf32>
    %379 = arith.addf %376, %378 : vector<8x128xf32>
    %380 = math.tanh %379 : vector<8x128xf32>
    %cst_77 = arith.constant 1.000000e+00 : f32
    %381 = vector.broadcast %cst_77 : f32 to vector<8x128xf32>
    %382 = arith.subf %381, %375 : vector<8x128xf32>
    %383 = arith.mulf %382, %380 : vector<8x128xf32>
    %384 = arith.mulf %375, %349 : vector<8x128xf32>
    %385 = arith.addf %383, %384 : vector<8x128xf32>
    %386 = vector.broadcast %351 : i32 to vector<8x1xi32>
    %387 = arith.cmpi slt, %386, %3 : vector<8x1xi32>
    %388 = vector.shape_cast %387 : vector<8x1xi1> to vector<8x1xi1>
    %389 = vector.broadcast %388 : vector<8x1xi1> to vector<8x128xi1>
    %390 = vector.broadcast %cst : f32 to vector<8x128xf32>
    %391 = arith.select %389, %385, %390 : vector<8x128xi1>, vector<8x128xf32>
    %392 = arith.index_cast %c7_i32 : i32 to index
    %c0_78 = arith.constant 0 : index
    %c0_79 = arith.constant 0 : index
    %393 = vector.load %arg6[%392, %c0_78, %c0_79] : memref<8x8x128xf32, #tpu.memory_space<vmem>>, vector<1x8x128xf32>
    %394 = vector.shape_cast %393 : vector<1x8x128xf32> to vector<8x128xf32>
    %395 = vector.shape_cast %391 : vector<8x128xf32> to vector<1x8x128xf32>
    tpu.vector_store %arg6[%392, %c0_78, %c0_79], %395 {strides = array<i32>} : memref<8x8x128xf32, #tpu.memory_space<vmem>>, vector<1x8x128xf32>,
    %396 = vector.shape_cast %387 : vector<8x1xi1> to vector<8x1xi1>
    %397 = vector.broadcast %396 : vector<8x1xi1> to vector<8x128xi1>
    %398 = arith.select %397, %385, %349 : vector<8x128xi1>, vector<8x128xf32>
    %c8_i32_80 = arith.constant 8 : i32
    %c0_81 = arith.constant 0 : index
    %c0_82 = arith.constant 0 : index
    %399 = vector.load %arg7[%c0_81, %c0_82] : memref<8x128xf32, #tpu.memory_space<vmem>>, vector<8x128xf32>
    tpu.vector_store %arg7[%c0_81, %c0_82], %398 {strides = array<i32>} : memref<8x128xf32, #tpu.memory_space<vmem>>, vector<8x128xf32>,
    return
  }
  func.func @transform_0(%arg0: i32, %arg1: i32) -> (i32, i32) {
    %c0_i32 = arith.constant 0 : i32
    %c0_i32_0 = arith.constant 0 : i32
    return %arg0, %c0_i32 : i32, i32
  }
  func.func @transform_1(%arg0: i32, %arg1: i32) -> (i32, i32, i32) {
    %c0_i32 = arith.constant 0 : i32
    %c0_i32_0 = arith.constant 0 : i32
    return %arg1, %arg0, %c0_i32 : i32, i32, i32
  }
  func.func @transform_2(%arg0: i32, %arg1: i32) -> (i32, i32) {
    %c0_i32 = arith.constant 0 : i32
    %c0_i32_0 = arith.constant 0 : i32
    %c0_i32_1 = arith.constant 0 : i32
    return %c0_i32, %c0_i32_0 : i32, i32
  }
  func.func @transform_3(%arg0: i32, %arg1: i32) -> (i32, i32) {
    %c0_i32 = arith.constant 0 : i32
    %c0_i32_0 = arith.constant 0 : i32
    %c0_i32_1 = arith.constant 0 : i32
    return %c0_i32, %c0_i32_0 : i32, i32
  }
  func.func @transform_4(%arg0: i32, %arg1: i32) -> (i32, i32, i32) {
    %c0_i32 = arith.constant 0 : i32
    %c0_i32_0 = arith.constant 0 : i32
    return %arg1, %arg0, %c0_i32 : i32, i32, i32
  }
}

</mosaic_0001>

<bundles_post_ra>
// kernel: tpu_custom_call.1
= control target key start
LH: loop header
LB: loop body
LE: loop exit
PB: predicated region body
PF: predicated region fallthrough
CT: control target
= control target key end

     0   :  { %9 = vsyncpa [#allocation4], 0  ;;  %s2198_s0 = inlined_call_operand.vmem [shape: s32[8,1], index: 0, kind: input, shape index: {}]   ;;  %s2199_s1 = inlined_call_operand.hbm [shape: bf16[8,8,384], index: 1, kind: input, shape index: {}]   ;;  %s2200_s2 = inlined_call_operand.hbm [shape: bf16[128,384], index: 2, kind: input, shape index: {}]   ;;  %s2201_s3 = inlined_call_operand.vmem [shape: f32[1,384], index: 3, kind: input, shape index: {}]   ;;  %s2202_s4 = inlined_call_operand.hbm [shape: f32[8,8,128], index: 4, kind: output, shape index: {}]  }
   0x1   :  { %10 = vsyncpa [#allocation7], 0 }
   0x2   :  { %11 = vsyncpa [#allocation5], 0  ;;  %s1717_s15 = smov [#allocation3]  }
   0x3   :  { %s19_s16 = sshll.u32 %s1717_s15, 4  ;;  %s20_s16 = int_to_ptr.vmem [resolvable:$true] %s19_s16 }
   0x4   :  { %s1659_s17 = scalar_lea.vmem %s20_s16, 1536  ;;  %p1664_p1 = scmp.lt.s32.totalorder %s20_s16, %s20_s16 }
   0x5   :  { %p1660_p0 = scmp.ne.s32.totalorder %s20_s16, %s1659_s17  ;;  %p1665_p2 = scmp.lt.s32.totalorder %s1659_s17, %s1659_s17 }
   0x7   :  { %p1666_p3 = por %p1665_p2, %p1664_p1 }
   0x9   :  { %p1667_p4 = pnand %p1666_p3, %p1660_p0 }
   0xb   :  { %1670 = shalt.err (!%p1667_p4)
}
   0xc   :  { %s1718_s18 = smov 192   ;;  %s1719_s19 = smov 12  }
   0xd   :  { %25 = dma.hbm_to_vmem [thread:$0]  %s2199_s1, 1536, %s20_s16, [#allocation4], %s1718_s18, %s1718_s18, %s1719_s19  }
   0xe   :  { %s1720_s22 = smov [#allocation6]  }
   0xf   :  { %s31_s23 = sshll.u32 %s1720_s22, 4  ;;  %s32_s23 = int_to_ptr.vmem [resolvable:$true] %s31_s23 }
  0x10   :  { %s1679_s24 = scalar_lea.vmem %s32_s23, 3072  ;;  %p1684_p6 = scmp.lt.s32.totalorder %s32_s23, %s32_s23 }
  0x11   :  { %p1680_p5 = scmp.ne.s32.totalorder %s32_s23, %s1679_s24  ;;  %p1685_p7 = scmp.lt.s32.totalorder %s1679_s24, %s1679_s24 }
  0x13   :  { %p1686_p8 = por %p1685_p7, %p1684_p6 }
  0x15   :  { %p1687_p9 = pnand %p1686_p8, %p1680_p5 }
  0x17   :  { %1690 = shalt.err (!%p1687_p9)
}
  0x18   :  { %37 = dma.hbm_to_vmem [thread:$0]  %s2200_s2, 3072, %s32_s23, [#allocation7], %s1718_s18, %s1718_s18, %s1719_s19  }
  0x19   :  { %1711 = dma.done.wait [#allocation4], 1536  }
  0x1a   :  { %1712 = vsyncadd [#allocation4], 4294965760 }
  0x1b   :  { %1713 = dma.done.wait [#allocation7], 3072  }
  0x1c   :  { %1714 = vsyncadd [#allocation7], 4294964224  ;;  %v1721_v0 = vmov 0.0   ;;  %v1722_v1 = vmov 0   ;;  %vm1723_vm0 = vmmov 0   ;;  %v1809_v16 = vld [vmem:[%s2198_s0] sm:$0xff]  ;;  %v90_v32 = vlaneseq }
  0x1d   :  { %1342 = vmatprep.subr.bf16.mxu1 %v1721_v0  ;;  %265 = vmatprep.mubr.bf16.mxu0 %v1722_v1  ;;  %v1765_v2 = vld [vmem:[#allocation6 + $0xac] ss:$12 sps:$4 sm:$0xff]   ;;  %v1767_v3 = vld [vmem:[#allocation6 + $0xa8] ss:$12 sps:$4 sm:$0xff]   ;;  %v1773_v5 = vld [vmem:[#allocation6 + $0x90] ss:$12 sps:$4 sm:$0xff]  }
  0x1e   :  { %1358 = vmatprep.mubr.msk.bf16.mxu1 %vm1723_vm0, %v1721_v0  ;;  %1513 = vset.pattern.permute.xlu0 %v1722_v1  ;;  %v1770_v4 = vld [vmem:[#allocation6 + $0x94] ss:$12 sps:$4 sm:$0xff]   ;;  %v1776_v6 = vld [vmem:[#allocation6 + $0x7c] ss:$12 sps:$4 sm:$0xff]   ;;  %v1779_v7 = vld [vmem:[#allocation6 + $0x78] ss:$12 sps:$4 sm:$0xff]  }
  0x1f   :  { %1514 = vset.pattern.permute.xlu1 %v1722_v1  ;;  %233 = vmatprep.subr.bf16.mxu0 %v1765_v2  ;;  %v1782_v8 = vld [vmem:[#allocation6 + $0x64] ss:$12 sps:$4 sm:$0xff]   ;;  %v1784_v9 = vld [vmem:[#allocation6 + $0x60] ss:$12 sps:$4 sm:$0xff]   ;;  %v1797_v13 = vld [vmem:[#allocation6 + $0x48] ss:$12 sps:$4 sm:$0xff]  }
  0x20   :  { %234 = vmatpush1.bf16.msra.mxu0 %v1767_v3  ;;  %v1787_v10 = vld [vmem:[#allocation6 + $0xb0] ss:$12 sps:$4 sm:$0xff]   ;;  %v1790_v11 = vld [vmem:[#allocation6 + $0x4c] ss:$12 sps:$4 sm:$0xff]   ;;  %v1800_v14 = vld [vmem:[#allocation6 + $0x34] ss:$12 sps:$4 sm:$0xff]  }
  0x21   :  { %235 = vmatprep.subr.bf16.mxu0 %v1770_v4  ;;  %1343 = vmatpush3.bf16.msra.mxu1 %v1787_v10  ;;  %v1793_v12 = vld [vmem:[#allocation6 + $0x98] ss:$12 sps:$4 sm:$0xff]   ;;  %v1803_v15 = vld [vmem:[#allocation6 + $0x80] ss:$12 sps:$4 sm:$0xff]   ;;  %v1812_v17 = vld [vmem:[#allocation6 + $0x30] ss:$12 sps:$4 sm:$0xff]  }
  0x22   :  { %1344 = vmatprep.subr.bf16.mxu1 %v1721_v0  ;;  %vm1242_vm1 = vcmp.gt.s32.totalorder %v1809_v16, 0  ;;  %vm1245_vm2 = vcmp.gt.s32.totalorder %v1809_v16, 1  ;;  %v1817_v18 = vld [vmem:[#allocation6 + $0x1c] ss:$12 sps:$4 sm:$0xff]   ;;  %v1826_v22 = vld [vmem:[#allocation6 + $0x18] ss:$12 sps:$4 sm:$0xff]  }
  0x23   :  { %v342_v19 = vsel %vm1242_vm1, 1, %v1722_v1  ;;  %v1821_v20 = vld [vmem:[#allocation6 + $0x68] ss:$12 sps:$4 sm:$0xff]   ;;  %v462_v21 = vsel %vm1245_vm2, 1, %v1722_v1  ;;  %vm1254_vm3 = vcmp.gt.s32.totalorder %v1809_v16, 4  ;;  %vm1260_vm4 = vcmp.gt.s32.totalorder %v1809_v16, 6 }
  0x24   :  { %236 = vmatpush1.bf16.msra.mxu0 %v1773_v5  ;;  %344 = vperm.xlu0 %1513, %v342_v19   ;;  %v1830_v23 = vld [vmem:[#allocation6 + $0x4] ss:$12 sps:$4 sm:$0xff]   ;;  %v825_v25 = vsel %vm1254_vm3, 1, %v1722_v1  ;;  %v1838_v26 = vld [vmem:[#allocation6] ss:$12 sps:$4 sm:$0xff]   ;;  %v1067_v28 = vsel %vm1260_vm4, 1, %v1722_v1 }
  0x25   :  { %237 = vmatprep.subr.bf16.mxu0 %v1776_v6  ;;  %1345 = vmatpush3.bf16.msra.mxu1 %v1793_v12  ;;  %v1833_v24 = vld [vmem:[#allocation6 + $0x50] ss:$12 sps:$4 sm:$0xff]   ;;  %v1843_v27 = vld [vmem:[#allocation6 + $0x38] ss:$12 sps:$4 sm:$0xff]   ;;  %v1850_v29 = vld [vmem:[#allocation6 + $0x20] ss:$12 sps:$4 sm:$0xff]  }
  0x26   :  { %1346 = vmatprep.subr.bf16.mxu1 %v1721_v0  ;;  %v1724_v30 = vmov 0.0|0.0   ;;  %v1857_v31 = vld [vmem:[#allocation6 + $0x8] ss:$12 sps:$4 sm:$0xff]   ;;  %v91_v33 = vshrl.u32 %v90_v32, 7  ;;  %v85_v35 = vld [vmem:[%s2201_s3] sm:$0x7] }
  0x27   :  { %v314_v36 = vld [vmem:[#allocation3] sm:$0xff]  ;;  %v1905_v61 = vld [vmem:[#allocation3 + $0x8] ss:$12 sps:$4 sm:$0xff]   ;;  %vm1248_vm7 = vcmp.gt.s32.totalorder %v1809_v16, 2  ;;  %vm1251_vm8 = vcmp.gt.s32.totalorder %v1809_v16, 3  ;;  %vm1257_vm9 = vcmp.gt.s32.totalorder %v1809_v16, 5 }
  0x28   :  { %238 = vmatpush1.bf16.msra.mxu0 %v1779_v7  ;;  %464 = vperm.xlu0 %1513, %v462_v21   ;;  %v92_v34 = vsub.s32 0, %v91_v33  ;;  %v96_v38 = vsub.s32 1, %v91_v33  ;;  %v316_v39 = vunpack.c.l.bf16 %v314_v36  ;;  %v317_v48 = vunpack.c.h.bf16 %v314_v36  ;;  %s1725_s3 = smov [#allocation8]  }
  0x29   :  { %239 = vmatprep.subr.bf16.mxu0 %v1782_v8  ;;  %1347 = vmatpush3.bf16.msra.mxu1 %v1803_v15  ;;  %v100_v58 = vsub.s32 2, %v91_v33  ;;  %v318_v19 = vunpack.c.l.bf16 %v1905_v61  ;;  %vm1263_vm10 = vcmp.gt.s32.totalorder %v1809_v16, 7  ;;  %s1203_s28 = sshll.u32 %s1725_s3, 4  ;;  %s1204_s28 = int_to_ptr.vmem [resolvable:$true] %s1203_s28 }
  0x2a   :  { %1348 = vmatprep.subr.bf16.mxu1 %v1721_v0  ;;  %v1897_v37 = vrot.slane %v85_v35, %v92_v34  ;;  %v1900_v42 = vrot.slane %v85_v35, %v96_v38  ;;  %s1691_s29 = scalar_lea.vmem %s1204_s28, 1024  ;;  %p1696_p11 = scmp.lt.s32.totalorder %s1204_s28, %s1204_s28 }
  0x2b   :  { %v1903_v59 = vrot.slane %v85_v35, %v100_v58  ;;  %p1692_p10 = scmp.ne.s32.totalorder %s1204_s28, %s1691_s29  ;;  %p1697_p12 = scmp.lt.s32.totalorder %s1691_s29, %s1691_s29 }
  0x2c   :  { %240 = vmatpush1.bf16.msra.mxu0 %v1784_v9  ;;  %827 = vperm.xlu0 %1513, %v825_v25  }
  0x2d   :  { %241 = vmatprep.subr.bf16.mxu0 %v1790_v11  ;;  %1349 = vmatpush3.bf16.msra.mxu1 %v1821_v20  ;;  %p1698_p13 = por %p1697_p12, %p1696_p11 }
  0x2e   :  { %1350 = vmatprep.subr.bf16.mxu1 %v1721_v0 }
  0x2f   :  { %p1699_p0 = pnand %p1698_p13, %p1692_p10 }
  0x30   :  { %242 = vmatpush1.bf16.msra.mxu0 %v1797_v13  ;;  %1069 = vperm.xlu0 %1513, %v1067_v28  }
  0x31   :  { %243 = vmatprep.subr.bf16.mxu0 %v1800_v14  ;;  %1351 = vmatpush3.bf16.msra.mxu1 %v1833_v24 }
  0x32   :  { %1352 = vmatprep.subr.bf16.mxu1 %v1721_v0 }
  0x34   :  { %244 = vmatpush1.bf16.msra.mxu0 %v1812_v17 }
  0x35   :  { %245 = vmatprep.subr.bf16.mxu0 %v1817_v18  ;;  %1353 = vmatpush3.bf16.msra.mxu1 %v1843_v27 }
  0x36   :  { %1354 = vmatprep.subr.bf16.mxu1 %v1721_v0 }
  0x38   :  { %246 = vmatpush1.bf16.msra.mxu0 %v1826_v22 }
  0x39   :  { %247 = vmatprep.subr.bf16.mxu0 %v1830_v23  ;;  %1355 = vmatpush3.bf16.msra.mxu1 %v1850_v29 }
  0x3a   :  { %1356 = vmatprep.subr.bf16.mxu1 %v1721_v0 }
  0x3c   :  { %248 = vmatpush1.bf16.msra.mxu0 %v1838_v26 }
  0x3d   :  { %352 = vmatprep.subr.bf16.mxu0 %v1765_v2  ;;  %1357 = vmatpush3.bf16.msra.mxu1 %v1857_v31 }
  0x3e   :  { %1362 = vmatprep.subr.bf16.mxu1 %v1721_v0 }
  0x3f   :  { %266 = vmatmul.mubr.bf16.vlgmr.msra.gmra.mxu0 %v1724_v30 }
  0x40   :  { %353 = vmatpush1.bf16.msra.mxu0 %v1767_v3  ;;  %384 = vmatprep.mubr.bf16.mxu0 %v1722_v1 }
  0x41   :  { %354 = vmatprep.subr.bf16.mxu0 %v1770_v4  ;;  %1359 = vmatmul.mubr.bf16.vlgmr.msra.gmra.mxu1 %v1724_v30 }
  0x42   :  { %1363 = vmatpush3.bf16.msra.mxu1 %v1787_v10  ;;  %1378 = vmatprep.mubr.msk.bf16.mxu1 %vm1723_vm0, %v1721_v0 }
  0x43   :  { %1364 = vmatprep.subr.bf16.mxu1 %v1721_v0 }
  0x44   :  { %355 = vmatpush1.bf16.msra.mxu0 %v1773_v5 }
  0x45   :  { %356 = vmatprep.subr.bf16.mxu0 %v1776_v6 }
  0x46   :  { %1365 = vmatpush3.bf16.msra.mxu1 %v1793_v12 }
  0x47   :  { %1366 = vmatprep.subr.bf16.mxu1 %v1721_v0 }
  0x48   :  { %357 = vmatpush1.bf16.msra.mxu0 %v1779_v7 }
  0x49   :  { %358 = vmatprep.subr.bf16.mxu0 %v1782_v8 }
  0x4a   :  { %1367 = vmatpush3.bf16.msra.mxu1 %v1803_v15 }
  0x4b   :  { %1368 = vmatprep.subr.bf16.mxu1 %v1721_v0 }
  0x4c   :  { %359 = vmatpush1.bf16.msra.mxu0 %v1784_v9 }
  0x4d   :  { %360 = vmatprep.subr.bf16.mxu0 %v1790_v11 }
  0x4e   :  { %1369 = vmatpush3.bf16.msra.mxu1 %v1821_v20 }
  0x4f   :  { %1370 = vmatprep.subr.bf16.mxu1 %v1721_v0 }
  0x50   :  { %361 = vmatpush1.bf16.msra.mxu0 %v1797_v13 }
  0x51   :  { %362 = vmatprep.subr.bf16.mxu0 %v1800_v14 }
  0x52   :  { %1371 = vmatpush3.bf16.msra.mxu1 %v1833_v24 }
  0x53   :  { %1372 = vmatprep.subr.bf16.mxu1 %v1721_v0 }
  0x54   :  { %363 = vmatpush1.bf16.msra.mxu0 %v1812_v17 }
  0x55   :  { %364 = vmatprep.subr.bf16.mxu0 %v1817_v18 }
  0x56   :  { %1373 = vmatpush3.bf16.msra.mxu1 %v1843_v27 }
  0x57   :  { %1374 = vmatprep.subr.bf16.mxu1 %v1721_v0 }
  0x58   :  { %365 = vmatpush1.bf16.msra.mxu0 %v1826_v22 }
  0x59   :  { %366 = vmatprep.subr.bf16.mxu0 %v1830_v23 }
  0x5a   :  { %1375 = vmatpush3.bf16.msra.mxu1 %v1850_v29 }
  0x5b   :  { %1376 = vmatprep.subr.bf16.mxu1 %v1721_v0 }
  0x5c   :  { %367 = vmatpush1.bf16.msra.mxu0 %v1838_v26 }
  0x5d   :  { %473 = vmatprep.subr.bf16.mxu0 %v1765_v2 }
  0x5e   :  { %1377 = vmatpush3.bf16.msra.mxu1 %v1857_v31 }
  0x5f   :  { %1382 = vmatprep.subr.bf16.mxu1 %v1721_v0 }
  0x9f   :  { %v1909_v36 = vpop.permute.xlu0 %344 }
  0xa0   :  { %vm346_vm5 = vcmp.eq.s32.totalorder %v1909_v36, 1  ;;  %v555_v36 = vld [vmem:[#allocation3 + $0x18] sm:$0xff] }
  0xa1   :  { %vm1264_vm6 = vmpackc.low %vm346_vm5, %vm346_vm5 }
  0xff   :  { %v267_v40 = vpop.f32.mrf.mxu0 }
 0x100   :  { %v268_v41 = vadd.f32 %v267_v40, %v1897_v37 }
 0x101   :  { %v269_v43 = vpop.f32.mrf.mxu0  ;;  %v308_v51 = vpop.f32.mrf.mxu1 }
 0x102   :  { %v319_v44 = vadd.f32 %v316_v39, %v268_v41  ;;  %v270_v47 = vadd.f32 %v269_v43, %v1900_v42  ;;  %v309_v63 = vadd.f32 %v308_v51, %v1903_v59  ;;  %v583_v41 = vsel %vm1248_vm7, 1, %v1722_v1 }
 0x103   :  { %v271_v45 = vpop.f32.mrf.mxu0  ;;  %v1360_v52 = vpop.f32.mrf.mxu1  ;;  %585 = vperm.xlu1 %1514, %v583_v41   ;;  %v704_v43 = vsel %vm1251_vm8, 1, %v1722_v1 }
 0x104   :  { %v1240_v46 = vmul.f32 -1.442695, %v319_v44  ;;  %v326_v50 = vadd.f32 %v317_v48, %v270_v47  ;;  %v946_v44 = vsel %vm1257_vm9, 1, %v1722_v1  ;;  %v1188_v45 = vsel %vm1263_vm10, 1, %v1722_v1 }
 0x105   :  { %v272_v49 = vpop.f32.mrf.mxu0  ;;  %v311_v54 = vpop.f32.mrf.mxu1 }
 0x106   :  { %1547 = vpow2.f32 %v1240_v46  ;;  %v1241_v53 = vmul.f32 -1.442695, %v326_v50  ;;  %v434_v46 = vld [vmem:[#allocation3 + $0xc] sm:$0xff] }
 0x107   :  { %v1361_v55 = vpop.f32.mrf.mxu1  ;;  %706 = vperm.xlu1 %1514, %v704_v43   ;;  %v436_v47 = vunpack.c.l.bf16 %v434_v46  ;;  %v437_v58 = vunpack.c.h.bf16 %v434_v46  ;;  %v465_v46 = vpop.permute.xlu0 %464 }
 0x108   :  { %1549 = vpow2.f32 %v1241_v53  ;;  %vm466_vm11 = vcmp.eq.s32.totalorder %v465_v46, 1 }
 0x10b   :  { %948 = vperm.xlu1 %1514, %v946_v44  }
 0x10f   :  { %1190 = vperm.xlu1 %1514, %v1188_v45  }
 0x113   :  { %v1548_v56 = vpop.eup %1547 }
 0x114   :  { %v323_v57 = vadd.f32 1.0, %v1548_v56 }
 0x115   :  { %v1550_v60 = vpop.eup %1549 }
 0x116   :  { %1551 = vrcp.f32 %v323_v57  ;;  %v330_v62 = vadd.f32 1.0, %v1550_v60 }
 0x118   :  { %1553 = vrcp.f32 %v330_v62 }
 0x123   :  { %v1552_v21 = vpop.eup %1551 }
 0x124   :  { %v333_v25 = vmul.f32 %v1552_v21, %v309_v63 }
 0x125   :  { %v1554_v30 = vpop.eup %1553 }
 0x126   :  { %v334_v28 = vadd.f32 %v333_v25, %v318_v19  ;;  %v336_v32 = vsub.f32 1.0, %v1554_v30  ;;  %v338_v35 = vmul.f32 0.0, %v1554_v30 }
 0x128   :  { %1555 = vtanh.f32 %v334_v28 }
 0x135   :  { %v1556_v34 = vpop.eup %1555 }
 0x136   :  { %v337_v33 = vmul.f32 %v1556_v34, %v336_v32  ;;  %v438_v32 = vunpack.c.h.bf16 %v1905_v61 }
 0x138   :  { %v1912_v38 = vadd.f32 %v338_v35, %v337_v33 }
 0x13a   :  { %v1265_v39 = vpack.c.bf16 %v1912_v38, %v1912_v38  ;;  %v347_v40 = vsel %vm346_vm5, %v1912_v38, -1.0  ;;  %v349_v43 = vsel %vm346_vm5, %v1912_v38, 0.0  ;;  %v557_v38 = vunpack.c.l.bf16 %v555_v36 }
 0x13b   :  { %348 = vst [vmem:[#allocation8] sm:$0xff] %v347_v40 }
 0x13c   :  { %1266 = vmatmul.mubr.msk.bf16.vlgmr.msra.gmra.mxu0 %vm1264_vm6, %v1265_v39  ;;  %1379 = vmatmul.mubr.msk.bf16.vlgmr.msra.gmra.mxu1 %vm1264_vm6, %v1265_v39 }
 0x13d   :  { %474 = vmatpush1.bf16.msra.mxu0 %v1767_v3  ;;  %1383 = vmatpush3.bf16.msra.mxu1 %v1787_v10 }
 0x13e   :  { %475 = vmatprep.subr.bf16.mxu0 %v1770_v4  ;;  %1384 = vmatprep.subr.bf16.mxu1 %v1721_v0 }
 0x13f   :  { %505 = vmatprep.mubr.bf16.mxu0 %v1722_v1  ;;  %1398 = vmatprep.mubr.msk.bf16.mxu1 %vm1723_vm0, %v1721_v0 }
 0x141   :  { %476 = vmatpush1.bf16.msra.mxu0 %v1773_v5  ;;  %1385 = vmatpush3.bf16.msra.mxu1 %v1793_v12 }
 0x142   :  { %477 = vmatprep.subr.bf16.mxu0 %v1776_v6  ;;  %1386 = vmatprep.subr.bf16.mxu1 %v1721_v0 }
 0x145   :  { %478 = vmatpush1.bf16.msra.mxu0 %v1779_v7  ;;  %1387 = vmatpush3.bf16.msra.mxu1 %v1803_v15 }
 0x146   :  { %479 = vmatprep.subr.bf16.mxu0 %v1782_v8  ;;  %1388 = vmatprep.subr.bf16.mxu1 %v1721_v0 }
 0x149   :  { %480 = vmatpush1.bf16.msra.mxu0 %v1784_v9  ;;  %1389 = vmatpush3.bf16.msra.mxu1 %v1821_v20 }
 0x14a   :  { %481 = vmatprep.subr.bf16.mxu0 %v1790_v11  ;;  %1390 = vmatprep.subr.bf16.mxu1 %v1721_v0 }
 0x14d   :  { %482 = vmatpush1.bf16.msra.mxu0 %v1797_v13  ;;  %1391 = vmatpush3.bf16.msra.mxu1 %v1833_v24 }
 0x14e   :  { %483 = vmatprep.subr.bf16.mxu0 %v1800_v14  ;;  %1392 = vmatprep.subr.bf16.mxu1 %v1721_v0 }
 0x151   :  { %484 = vmatpush1.bf16.msra.mxu0 %v1812_v17  ;;  %1393 = vmatpush3.bf16.msra.mxu1 %v1843_v27 }
 0x152   :  { %485 = vmatprep.subr.bf16.mxu0 %v1817_v18  ;;  %1394 = vmatprep.subr.bf16.mxu1 %v1721_v0 }
 0x155   :  { %486 = vmatpush1.bf16.msra.mxu0 %v1826_v22  ;;  %1395 = vmatpush3.bf16.msra.mxu1 %v1850_v29 }
 0x156   :  { %487 = vmatprep.subr.bf16.mxu0 %v1830_v23  ;;  %1396 = vmatprep.subr.bf16.mxu1 %v1721_v0 }
 0x159   :  { %488 = vmatpush1.bf16.msra.mxu0 %v1838_v26  ;;  %1397 = vmatpush3.bf16.msra.mxu1 %v1857_v31 }
 0x15a   :  { %594 = vmatprep.subr.bf16.mxu0 %v1765_v2  ;;  %1402 = vmatprep.subr.bf16.mxu1 %v1721_v0 }
 0x17e   :  { %v586_v46 = vpop.permute.xlu1 %585 }
 0x17f   :  { %vm587_vm12 = vcmp.eq.s32.totalorder %v586_v46, 1 }
 0x1fc   :  { %v386_v48 = vpop.f32.mrf.mxu0  ;;  %v427_v49 = vpop.f32.mrf.mxu1 }
 0x1fd   :  { %v387_v50 = vadd.f32 %v386_v48, %v1897_v37  ;;  %v428_v30 = vadd.f32 %v427_v49, %v1903_v59 }
 0x1fe   :  { %v388_v51 = vpop.f32.mrf.mxu0  ;;  %v1380_v52 = vpop.f32.mrf.mxu1 }
 0x1ff   :  { %v439_v53 = vadd.f32 %v436_v47, %v387_v50  ;;  %v389_v57 = vadd.f32 %v388_v51, %v1900_v42 }
 0x200   :  { %v390_v54 = vpop.f32.mrf.mxu0  ;;  %v430_v55 = vpop.f32.mrf.mxu1 }
 0x201   :  { %v1243_v56 = vmul.f32 -1.442695, %v439_v53  ;;  %v446_v62 = vadd.f32 %v437_v58, %v389_v57 }
 0x202   :  { %v391_v16 = vpop.f32.mrf.mxu0  ;;  %v1381_v60 = vpop.f32.mrf.mxu1 }
 0x203   :  { %1557 = vpow2.f32 %v1243_v56  ;;  %v1244_v63 = vmul.f32 -1.442695, %v446_v62  ;;  %v558_v60 = vunpack.c.h.bf16 %v555_v36 }
 0x205   :  { %1559 = vpow2.f32 %v1244_v63 }
 0x210   :  { %v1558_v19 = vpop.eup %1557 }
 0x211   :  { %v443_v21 = vadd.f32 1.0, %v1558_v19 }
 0x212   :  { %v1560_v25 = vpop.eup %1559 }
 0x213   :  { %1561 = vrcp.f32 %v443_v21  ;;  %v450_v28 = vadd.f32 1.0, %v1560_v25 }
 0x215   :  { %1563 = vrcp.f32 %v450_v28 }
 0x220   :  { %v1562_v34 = vpop.eup %1561 }
 0x221   :  { %v453_v33 = vmul.f32 %v1562_v34, %v428_v30 }
 0x222   :  { %v1564_v39 = vpop.eup %1563 }
 0x223   :  { %v454_v35 = vadd.f32 %v453_v33, %v438_v32  ;;  %v456_v40 = vsub.f32 1.0, %v1564_v39  ;;  %v458_v45 = vmul.f32 %v1564_v39, %v349_v43  ;;  %v2013_v32 = vld [vmem:[#allocation3 + $0x20] ss:$12 sps:$4 sm:$0xff]  }
 0x225   :  { %1565 = vtanh.f32 %v454_v35  ;;  %v559_v35 = vunpack.c.l.bf16 %v2013_v32 }
 0x232   :  { %v1566_v41 = vpop.eup %1565 }
 0x233   :  { %v457_v44 = vmul.f32 %v1566_v41, %v456_v40 }
 0x235   :  { %v459_v47 = vadd.f32 %v458_v45, %v457_v44 }
 0x237   :  { %v467_v48 = vsel %vm466_vm11, %v459_v47, -1.0  ;;  %v1972_v49 = vsel %vm466_vm11, %v459_v47, %v349_v43 }
 0x238   :  { %469 = vst [vmem:[#allocation8 + $0x8] sm:$0xff] %v467_v48  ;;  %v472_v61 = vpack.c.bf16 %v1972_v49, %v1972_v49 }
 0x23a   :  { %506 = vmatmul.mubr.bf16.vlgmr.msra.gmra.mxu0 %v472_v61  ;;  %1399 = vmatmul.mubr.bf16.vlgmr.msra.gmra.mxu1 %v472_v61 }
 0x23b   :  { %595 = vmatpush1.bf16.msra.mxu0 %v1767_v3  ;;  %1403 = vmatpush3.bf16.msra.mxu1 %v1787_v10 }
 0x23c   :  { %596 = vmatprep.subr.bf16.mxu0 %v1770_v4  ;;  %1404 = vmatprep.subr.bf16.mxu1 %v1721_v0 }
 0x23d   :  { %626 = vmatprep.mubr.bf16.mxu0 %v1722_v1  ;;  %1418 = vmatprep.mubr.msk.bf16.mxu1 %vm1723_vm0, %v1721_v0 }
 0x23f   :  { %597 = vmatpush1.bf16.msra.mxu0 %v1773_v5  ;;  %1405 = vmatpush3.bf16.msra.mxu1 %v1793_v12 }
 0x240   :  { %598 = vmatprep.subr.bf16.mxu0 %v1776_v6  ;;  %1406 = vmatprep.subr.bf16.mxu1 %v1721_v0 }
 0x243   :  { %599 = vmatpush1.bf16.msra.mxu0 %v1779_v7  ;;  %1407 = vmatpush3.bf16.msra.mxu1 %v1803_v15 }
 0x244   :  { %600 = vmatprep.subr.bf16.mxu0 %v1782_v8  ;;  %1408 = vmatprep.subr.bf16.mxu1 %v1721_v0 }
 0x247   :  { %601 = vmatpush1.bf16.msra.mxu0 %v1784_v9  ;;  %1409 = vmatpush3.bf16.msra.mxu1 %v1821_v20 }
 0x248   :  { %602 = vmatprep.subr.bf16.mxu0 %v1790_v11  ;;  %1410 = vmatprep.subr.bf16.mxu1 %v1721_v0 }
 0x24b   :  { %603 = vmatpush1.bf16.msra.mxu0 %v1797_v13  ;;  %1411 = vmatpush3.bf16.msra.mxu1 %v1833_v24 }
 0x24c   :  { %604 = vmatprep.subr.bf16.mxu0 %v1800_v14  ;;  %1412 = vmatprep.subr.bf16.mxu1 %v1721_v0 }
 0x24f   :  { %605 = vmatpush1.bf16.msra.mxu0 %v1812_v17  ;;  %1413 = vmatpush3.bf16.msra.mxu1 %v1843_v27 }
 0x250   :  { %606 = vmatprep.subr.bf16.mxu0 %v1817_v18  ;;  %1414 = vmatprep.subr.bf16.mxu1 %v1721_v0 }
 0x253   :  { %607 = vmatpush1.bf16.msra.mxu0 %v1826_v22  ;;  %1415 = vmatpush3.bf16.msra.mxu1 %v1850_v29 }
 0x254   :  { %608 = vmatprep.subr.bf16.mxu0 %v1830_v23  ;;  %1416 = vmatprep.subr.bf16.mxu1 %v1721_v0 }
 0x257   :  { %609 = vmatpush1.bf16.msra.mxu0 %v1838_v26  ;;  %1417 = vmatpush3.bf16.msra.mxu1 %v1857_v31 }
 0x258   :  { %715 = vmatprep.subr.bf16.mxu0 %v1765_v2  ;;  %1422 = vmatprep.subr.bf16.mxu1 %v1721_v0 }
 0x2fa   :  { %v507_v50 = vpop.f32.mrf.mxu0  ;;  %v548_v51 = vpop.f32.mrf.mxu1 }
 0x2fb   :  { %v508_v52 = vadd.f32 %v507_v50, %v1897_v37  ;;  %v549_v33 = vadd.f32 %v548_v51, %v1903_v59 }
 0x2fc   :  { %v509_v53 = vpop.f32.mrf.mxu0  ;;  %v1400_v54 = vpop.f32.mrf.mxu1 }
 0x2fd   :  { %v560_v55 = vadd.f32 %v557_v38, %v508_v52  ;;  %v510_v16 = vadd.f32 %v509_v53, %v1900_v42 }
 0x2fe   :  { %v511_v56 = vpop.f32.mrf.mxu0  ;;  %v551_v57 = vpop.f32.mrf.mxu1 }
 0x2ff   :  { %v1246_v58 = vmul.f32 -1.442695, %v560_v55  ;;  %v567_v19 = vadd.f32 %v558_v60, %v510_v16 }
 0x300   :  { %v512_v62 = vpop.f32.mrf.mxu0  ;;  %v1401_v63 = vpop.f32.mrf.mxu1 }
 0x301   :  { %1567 = vpow2.f32 %v1246_v58  ;;  %v1247_v21 = vmul.f32 -1.442695, %v567_v19 }
 0x303   :  { %1569 = vpow2.f32 %v1247_v21 }
 0x30e   :  { %v1568_v25 = vpop.eup %1567 }
 0x30f   :  { %v564_v28 = vadd.f32 1.0, %v1568_v25 }
 0x310   :  { %v1570_v30 = vpop.eup %1569 }
 0x311   :  { %1571 = vrcp.f32 %v564_v28  ;;  %v571_v34 = vadd.f32 1.0, %v1570_v30 }
 0x313   :  { %1573 = vrcp.f32 %v571_v34 }
 0x31e   :  { %v1572_v39 = vpop.eup %1571 }
 0x31f   :  { %v574_v40 = vmul.f32 %v1572_v39, %v549_v33 }
 0x320   :  { %v1574_v43 = vpop.eup %1573 }
 0x321   :  { %v575_v41 = vadd.f32 %v574_v40, %v559_v35  ;;  %v577_v44 = vsub.f32 1.0, %v1574_v43  ;;  %v579_v48 = vmul.f32 %v1574_v43, %v1972_v49  ;;  %v680_v40 = vunpack.c.h.bf16 %v2013_v32 }
 0x323   :  { %1575 = vtanh.f32 %v575_v41 }
 0x330   :  { %v1576_v45 = vpop.eup %1575 }
 0x331   :  { %v578_v47 = vmul.f32 %v1576_v45, %v577_v44 }
 0x333   :  { %v580_v61 = vadd.f32 %v579_v48, %v578_v47 }
 0x335   :  { %v588_v36 = vsel %vm587_vm12, %v580_v61, -1.0  ;;  %v2019_v38 = vsel %vm587_vm12, %v580_v61, %v1972_v49  ;;  %v676_v49 = vld [vmem:[#allocation3 + $0x24] sm:$0xff] }
 0x336   :  { %590 = vst [vmem:[#allocation8 + $0x10] sm:$0xff] %v588_v36  ;;  %v593_v50 = vpack.c.bf16 %v2019_v38, %v2019_v38  ;;  %v678_v51 = vunpack.c.l.bf16 %v676_v49  ;;  %v679_v63 = vunpack.c.h.bf16 %v676_v49  ;;  %v707_v36 = vpop.permute.xlu1 %706 }
 0x337   :  { %vm708_vm13 = vcmp.eq.s32.totalorder %v707_v36, 1  ;;  %v2115_v36 = vld [vmem:[#allocation6 + $0xa8] ss:$12 sps:$4 sm:$0xff]  }
 0x338   :  { %627 = vmatmul.mubr.bf16.vlgmr.msra.gmra.mxu0 %v593_v50  ;;  %1419 = vmatmul.mubr.bf16.vlgmr.msra.gmra.mxu1 %v593_v50 }
 0x339   :  { %716 = vmatpush1.bf16.msra.mxu0 %v1767_v3  ;;  %1423 = vmatpush3.bf16.msra.mxu1 %v1787_v10 }
 0x33a   :  { %717 = vmatprep.subr.bf16.mxu0 %v1770_v4  ;;  %1424 = vmatprep.subr.bf16.mxu1 %v1721_v0 }
 0x33b   :  { %747 = vmatprep.mubr.bf16.mxu0 %v1722_v1  ;;  %1438 = vmatprep.mubr.msk.bf16.mxu1 %vm1723_vm0, %v1721_v0 }
 0x33d   :  { %718 = vmatpush1.bf16.msra.mxu0 %v1773_v5  ;;  %1425 = vmatpush3.bf16.msra.mxu1 %v1793_v12 }
 0x33e   :  { %719 = vmatprep.subr.bf16.mxu0 %v1776_v6  ;;  %1426 = vmatprep.subr.bf16.mxu1 %v1721_v0 }
 0x341   :  { %720 = vmatpush1.bf16.msra.mxu0 %v1779_v7  ;;  %1427 = vmatpush3.bf16.msra.mxu1 %v1803_v15 }
 0x342   :  { %721 = vmatprep.subr.bf16.mxu0 %v1782_v8  ;;  %1428 = vmatprep.subr.bf16.mxu1 %v1721_v0 }
 0x345   :  { %722 = vmatpush1.bf16.msra.mxu0 %v1784_v9  ;;  %1429 = vmatpush3.bf16.msra.mxu1 %v1821_v20 }
 0x346   :  { %723 = vmatprep.subr.bf16.mxu0 %v1790_v11  ;;  %1430 = vmatprep.subr.bf16.mxu1 %v1721_v0 }
 0x349   :  { %724 = vmatpush1.bf16.msra.mxu0 %v1797_v13  ;;  %1431 = vmatpush3.bf16.msra.mxu1 %v1833_v24 }
 0x34a   :  { %725 = vmatprep.subr.bf16.mxu0 %v1800_v14  ;;  %1432 = vmatprep.subr.bf16.mxu1 %v1721_v0 }
 0x34d   :  { %726 = vmatpush1.bf16.msra.mxu0 %v1812_v17  ;;  %1433 = vmatpush3.bf16.msra.mxu1 %v1843_v27 }
 0x34e   :  { %727 = vmatprep.subr.bf16.mxu0 %v1817_v18  ;;  %1434 = vmatprep.subr.bf16.mxu1 %v1721_v0 }
 0x351   :  { %728 = vmatpush1.bf16.msra.mxu0 %v1826_v22  ;;  %1435 = vmatpush3.bf16.msra.mxu1 %v1850_v29 }
 0x352   :  { %729 = vmatprep.subr.bf16.mxu0 %v1830_v23  ;;  %1436 = vmatprep.subr.bf16.mxu1 %v1721_v0 }
 0x355   :  { %730 = vmatpush1.bf16.msra.mxu0 %v1838_v26  ;;  %1437 = vmatpush3.bf16.msra.mxu1 %v1857_v31 }
 0x356   :  { %836 = vmatprep.subr.bf16.mxu0 %v1765_v2  ;;  %1442 = vmatprep.subr.bf16.mxu1 %v1721_v0 }
 0x3f8   :  { %v628_v52 = vpop.f32.mrf.mxu0  ;;  %v669_v53 = vpop.f32.mrf.mxu1 }
 0x3f9   :  { %v629_v54 = vadd.f32 %v628_v52, %v1897_v37  ;;  %v670_v39 = vadd.f32 %v669_v53, %v1903_v59 }
 0x3fa   :  { %v630_v55 = vpop.f32.mrf.mxu0  ;;  %v1420_v56 = vpop.f32.mrf.mxu1 }
 0x3fb   :  { %v681_v57 = vadd.f32 %v678_v51, %v629_v54  ;;  %v631_v62 = vadd.f32 %v630_v55, %v1900_v42 }
 0x3fc   :  { %v632_v58 = vpop.f32.mrf.mxu0  ;;  %v672_v16 = vpop.f32.mrf.mxu1 }
 0x3fd   :  { %v1249_v60 = vmul.f32 -1.442695, %v681_v57  ;;  %v688_v25 = vadd.f32 %v679_v63, %v631_v62 }
 0x3fe   :  { %v633_v19 = vpop.f32.mrf.mxu0  ;;  %v1421_v21 = vpop.f32.mrf.mxu1 }
 0x3ff   :  { %1577 = vpow2.f32 %v1249_v60  ;;  %v1250_v28 = vmul.f32 -1.442695, %v688_v25  ;;  %v2105_v21 = vld [vmem:[#allocation3 + $0x38] ss:$12 sps:$4 sm:$0xff]  }
 0x401   :  { %1579 = vpow2.f32 %v1250_v28 }
 0x40c   :  { %v1578_v30 = vpop.eup %1577 }
 0x40d   :  { %v685_v34 = vadd.f32 1.0, %v1578_v30  ;;  %v801_v30 = vunpack.c.l.bf16 %v2105_v21 }
 0x40e   :  { %v1580_v33 = vpop.eup %1579 }
 0x40f   :  { %1581 = vrcp.f32 %v685_v34  ;;  %v692_v35 = vadd.f32 1.0, %v1580_v33 }
 0x411   :  { %1583 = vrcp.f32 %v692_v35 }
 0x41c   :  { %v1582_v41 = vpop.eup %1581 }
 0x41d   :  { %v695_v43 = vmul.f32 %v1582_v41, %v670_v39 }
 0x41e   :  { %v1584_v45 = vpop.eup %1583 }
 0x41f   :  { %v696_v44 = vadd.f32 %v695_v43, %v680_v40  ;;  %v698_v46 = vsub.f32 1.0, %v1584_v45  ;;  %v700_v61 = vmul.f32 %v1584_v45, %v2019_v38  ;;  %v828_v45 = vpop.permute.xlu0 %827 }
 0x420   :  { %vm829_vm14 = vcmp.eq.s32.totalorder %v828_v45, 1  ;;  %v1646_v45 = vld [vmem:[#allocation6 + $0x18] ss:$12 sps:$4 sm:$0xff]  }
 0x421   :  { %1585 = vtanh.f32 %v696_v44 }
 0x42e   :  { %v1586_v47 = vpop.eup %1585 }
 0x42f   :  { %v699_v48 = vmul.f32 %v1586_v47, %v698_v46 }
 0x431   :  { %v701_v50 = vadd.f32 %v700_v61, %v699_v48 }
 0x433   :  { %v709_v49 = vsel %vm708_vm13, %v701_v50, -1.0  ;;  %v2064_v51 = vsel %vm708_vm13, %v701_v50, %v2019_v38  ;;  %v2119_v50 = vld [vmem:[#allocation6 + $0x94] ss:$12 sps:$4 sm:$0xff]  }
 0x434   :  { %711 = vst [vmem:[#allocation8 + $0x18] sm:$0xff] %v709_v49  ;;  %v714_v32 = vpack.c.bf16 %v2064_v51, %v2064_v51  ;;  %v2126_v49 = vld [vmem:[#allocation6 + $0x90] ss:$12 sps:$4 sm:$0xff]  }
 0x436   :  { %748 = vmatmul.mubr.bf16.vlgmr.msra.gmra.mxu0 %v714_v32  ;;  %1439 = vmatmul.mubr.bf16.vlgmr.msra.gmra.mxu1 %v714_v32  ;;  %v2138_v32 = vld [vmem:[#allocation6 + $0x64] ss:$12 sps:$4 sm:$0xff]  }
 0x437   :  { %837 = vmatpush1.bf16.msra.mxu0 %v1767_v3  ;;  %1443 = vmatpush3.bf16.msra.mxu1 %v1787_v10  ;;  %v797_v3 = vld [vmem:[#allocation3 + $0x30] sm:$0xff] }
 0x438   :  { %838 = vmatprep.subr.bf16.mxu0 %v1770_v4  ;;  %1444 = vmatprep.subr.bf16.mxu1 %v1721_v0  ;;  %v799_v4 = vunpack.c.l.bf16 %v797_v3  ;;  %v800_v57 = vunpack.c.h.bf16 %v797_v3 }
 0x439   :  { %868 = vmatprep.mubr.bf16.mxu0 %v1722_v1  ;;  %1458 = vmatprep.mubr.msk.bf16.mxu1 %vm1723_vm0, %v1721_v0 }
 0x43b   :  { %839 = vmatpush1.bf16.msra.mxu0 %v1773_v5  ;;  %1445 = vmatpush3.bf16.msra.mxu1 %v1793_v12 }
 0x43c   :  { %840 = vmatprep.subr.bf16.mxu0 %v1776_v6  ;;  %1446 = vmatprep.subr.bf16.mxu1 %v1721_v0 }
 0x43f   :  { %841 = vmatpush1.bf16.msra.mxu0 %v1779_v7  ;;  %1447 = vmatpush3.bf16.msra.mxu1 %v1803_v15 }
 0x440   :  { %842 = vmatprep.subr.bf16.mxu0 %v1782_v8  ;;  %1448 = vmatprep.subr.bf16.mxu1 %v1721_v0 }
 0x443   :  { %843 = vmatpush1.bf16.msra.mxu0 %v1784_v9  ;;  %1449 = vmatpush3.bf16.msra.mxu1 %v1821_v20 }
 0x444   :  { %844 = vmatprep.subr.bf16.mxu0 %v1790_v11  ;;  %1450 = vmatprep.subr.bf16.mxu1 %v1721_v0 }
 0x447   :  { %845 = vmatpush1.bf16.msra.mxu0 %v1797_v13  ;;  %1451 = vmatpush3.bf16.msra.mxu1 %v1833_v24 }
 0x448   :  { %846 = vmatprep.subr.bf16.mxu0 %v1800_v14  ;;  %1452 = vmatprep.subr.bf16.mxu1 %v1721_v0 }
 0x44b   :  { %847 = vmatpush1.bf16.msra.mxu0 %v1812_v17  ;;  %1453 = vmatpush3.bf16.msra.mxu1 %v1843_v27 }
 0x44c   :  { %848 = vmatprep.subr.bf16.mxu0 %v1817_v18  ;;  %1454 = vmatprep.subr.bf16.mxu1 %v1721_v0 }
 0x44f   :  { %849 = vmatpush1.bf16.msra.mxu0 %v1826_v22  ;;  %1455 = vmatpush3.bf16.msra.mxu1 %v1850_v29 }
 0x450   :  { %850 = vmatprep.subr.bf16.mxu0 %v1830_v23  ;;  %1456 = vmatprep.subr.bf16.mxu1 %v1721_v0 }
 0x453   :  { %851 = vmatpush1.bf16.msra.mxu0 %v1838_v26  ;;  %1457 = vmatpush3.bf16.msra.mxu1 %v1857_v31 }
 0x454   :  { %957 = vmatprep.subr.bf16.mxu0 %v1765_v2  ;;  %1462 = vmatprep.subr.bf16.mxu1 %v1721_v0 }
 0x4f6   :  { %v749_v5 = vpop.f32.mrf.mxu0  ;;  %v790_v6 = vpop.f32.mrf.mxu1 }
 0x4f7   :  { %v750_v7 = vadd.f32 %v749_v5, %v1897_v37  ;;  %v791_v28 = vadd.f32 %v790_v6, %v1903_v59 }
 0x4f8   :  { %v751_v8 = vpop.f32.mrf.mxu0  ;;  %v1440_v38 = vpop.f32.mrf.mxu1 }
 0x4f9   :  { %v802_v52 = vadd.f32 %v799_v4, %v750_v7  ;;  %v752_v56 = vadd.f32 %v751_v8, %v1900_v42 }
 0x4fa   :  { %v753_v53 = vpop.f32.mrf.mxu0  ;;  %v793_v54 = vpop.f32.mrf.mxu1 }
 0x4fb   :  { %v1252_v55 = vmul.f32 -1.442695, %v802_v52  ;;  %v809_v2 = vadd.f32 %v800_v57, %v752_v56  ;;  %v922_v52 = vunpack.c.h.bf16 %v2105_v21 }
 0x4fc   :  { %v754_v58 = vpop.f32.mrf.mxu0  ;;  %v1441_v16 = vpop.f32.mrf.mxu1 }
 0x4fd   :  { %1587 = vpow2.f32 %v1252_v55  ;;  %v1253_v60 = vmul.f32 -1.442695, %v809_v2 }
 0x4ff   :  { %1589 = vpow2.f32 %v1253_v60  ;;  %v949_v60 = vpop.permute.xlu1 %948 }
 0x500   :  { %vm950_vm15 = vcmp.eq.s32.totalorder %v949_v60, 1 }
 0x50a   :  { %v1588_v62 = vpop.eup %1587 }
 0x50b   :  { %v806_v63 = vadd.f32 1.0, %v1588_v62 }
 0x50c   :  { %v1590_v19 = vpop.eup %1589 }
 0x50d   :  { %1591 = vrcp.f32 %v806_v63  ;;  %v813_v25 = vadd.f32 1.0, %v1590_v19 }
 0x50f   :  { %1593 = vrcp.f32 %v813_v25  ;;  %v1634_v25 = vld [vmem:[#allocation6 + $0xb0] ss:$12 sps:$4 sm:$0xff]  }
 0x51a   :  { %v1592_v34 = vpop.eup %1591 }
 0x51b   :  { %v816_v33 = vmul.f32 %v1592_v34, %v791_v28  ;;  %v1635_v28 = vld [vmem:[#allocation6 + $0x98] ss:$12 sps:$4 sm:$0xff]   ;;  %v1638_v34 = vld [vmem:[#allocation6 + $0x68] ss:$12 sps:$4 sm:$0xff]  }
 0x51c   :  { %v1594_v39 = vpop.eup %1593 }
 0x51d   :  { %v817_v35 = vadd.f32 %v816_v33, %v801_v30  ;;  %v819_v40 = vsub.f32 1.0, %v1594_v39  ;;  %v821_v44 = vmul.f32 %v1594_v39, %v2064_v51  ;;  %v1636_v30 = vld [vmem:[#allocation6 + $0x80] ss:$12 sps:$4 sm:$0xff]   ;;  %v1641_v39 = vld [vmem:[#allocation6 + $0x50] ss:$12 sps:$4 sm:$0xff]  }
 0x51e   :  { %v1639_v33 = vld [vmem:[#allocation6 + $0x4c] ss:$12 sps:$4 sm:$0xff]  }
 0x51f   :  { %1595 = vtanh.f32 %v817_v35  ;;  %v1640_v35 = vld [vmem:[#allocation6 + $0x48] ss:$12 sps:$4 sm:$0xff]  }
 0x52c   :  { %v1596_v41 = vpop.eup %1595 }
 0x52d   :  { %v820_v43 = vmul.f32 %v1596_v41, %v819_v40  ;;  %v1642_v40 = vld [vmem:[#allocation6 + $0x34] ss:$12 sps:$4 sm:$0xff]   ;;  %v1643_v41 = vld [vmem:[#allocation6 + $0x30] ss:$12 sps:$4 sm:$0xff]  }
 0x52f   :  { %v822_v46 = vadd.f32 %v821_v44, %v820_v43  ;;  %v1644_v43 = vld [vmem:[#allocation6 + $0x38] ss:$12 sps:$4 sm:$0xff]   ;;  %v1645_v44 = vld [vmem:[#allocation6 + $0x1c] ss:$12 sps:$4 sm:$0xff]  }
 0x531   :  { %v830_v47 = vsel %vm829_vm14, %v822_v46, -1.0  ;;  %v2111_v48 = vsel %vm829_vm14, %v822_v46, %v2064_v51  ;;  %v2130_v51 = vld [vmem:[#allocation6 + $0x7c] ss:$12 sps:$4 sm:$0xff]   ;;  %v1647_v46 = vld [vmem:[#allocation6 + $0x20] ss:$12 sps:$4 sm:$0xff]  }
 0x532   :  { %832 = vst [vmem:[#allocation8 + $0x20] sm:$0xff] %v830_v47  ;;  %v835_v61 = vpack.c.bf16 %v2111_v48, %v2111_v48  ;;  %v1648_v47 = vld [vmem:[#allocation6 + $0x4] ss:$12 sps:$4 sm:$0xff]  }
 0x534   :  { %869 = vmatmul.mubr.bf16.vlgmr.msra.gmra.mxu0 %v835_v61  ;;  %1459 = vmatmul.mubr.bf16.vlgmr.msra.gmra.mxu1 %v835_v61  ;;  %v1650_v61 = vld [vmem:[#allocation6 + $0x8] ss:$12 sps:$4 sm:$0xff]  }
 0x535   :  { %958 = vmatpush1.bf16.msra.mxu0 %v2115_v36  ;;  %1463 = vmatpush3.bf16.msra.mxu1 %v1787_v10  ;;  %v2134_v10 = vld [vmem:[#allocation6 + $0x78] ss:$12 sps:$4 sm:$0xff]  }
 0x536   :  { %959 = vmatprep.subr.bf16.mxu0 %v2119_v50  ;;  %1464 = vmatprep.subr.bf16.mxu1 %v1721_v0 }
 0x537   :  { %989 = vmatprep.mubr.bf16.mxu0 %v1722_v1  ;;  %1478 = vmatprep.mubr.msk.bf16.mxu1 %vm1723_vm0, %v1721_v0 }
 0x539   :  { %960 = vmatpush1.bf16.msra.mxu0 %v2126_v49  ;;  %1465 = vmatpush3.bf16.msra.mxu1 %v1793_v12 }
 0x53a   :  { %961 = vmatprep.subr.bf16.mxu0 %v2130_v51  ;;  %1466 = vmatprep.subr.bf16.mxu1 %v1721_v0 }
 0x53d   :  { %962 = vmatpush1.bf16.msra.mxu0 %v2134_v10  ;;  %1467 = vmatpush3.bf16.msra.mxu1 %v1803_v15 }
 0x53e   :  { %963 = vmatprep.subr.bf16.mxu0 %v2138_v32  ;;  %1468 = vmatprep.subr.bf16.mxu1 %v1721_v0 }
 0x541   :  { %964 = vmatpush1.bf16.msra.mxu0 %v1784_v9  ;;  %1469 = vmatpush3.bf16.msra.mxu1 %v1821_v20  ;;  %v1633_v9 = vld [vmem:[#allocation6 + $0xac] ss:$12 sps:$4 sm:$0xff]  }
 0x542   :  { %965 = vmatprep.subr.bf16.mxu0 %v1790_v11  ;;  %1470 = vmatprep.subr.bf16.mxu1 %v1721_v0  ;;  %v918_v11 = vld [vmem:[#allocation3 + $0x3c] sm:$0xff] }
 0x543   :  { %v920_v12 = vunpack.c.l.bf16 %v918_v11 }
 0x545   :  { %966 = vmatpush1.bf16.msra.mxu0 %v1797_v13  ;;  %1471 = vmatpush3.bf16.msra.mxu1 %v1833_v24 }
 0x546   :  { %967 = vmatprep.subr.bf16.mxu0 %v1800_v14  ;;  %1472 = vmatprep.subr.bf16.mxu1 %v1721_v0 }
 0x549   :  { %968 = vmatpush1.bf16.msra.mxu0 %v1812_v17  ;;  %1473 = vmatpush3.bf16.msra.mxu1 %v1843_v27  ;;  %v921_v27 = vunpack.c.h.bf16 %v918_v11 }
 0x54a   :  { %969 = vmatprep.subr.bf16.mxu0 %v1817_v18  ;;  %1474 = vmatprep.subr.bf16.mxu1 %v1721_v0 }
 0x54d   :  { %970 = vmatpush1.bf16.msra.mxu0 %v1826_v22  ;;  %1475 = vmatpush3.bf16.msra.mxu1 %v1850_v29 }
 0x54e   :  { %971 = vmatprep.subr.bf16.mxu0 %v1830_v23  ;;  %1476 = vmatprep.subr.bf16.mxu1 %v1721_v0 }
 0x551   :  { %972 = vmatpush1.bf16.msra.mxu0 %v1838_v26  ;;  %1477 = vmatpush3.bf16.msra.mxu1 %v1857_v31 }
 0x552   :  { %1078 = vmatprep.subr.bf16.mxu0 %v1633_v9  ;;  %1482 = vmatprep.subr.bf16.mxu1 %v1721_v0 }
 0x5f4   :  { %v870_v13 = vpop.f32.mrf.mxu0  ;;  %v911_v14 = vpop.f32.mrf.mxu1 }
 0x5f5   :  { %v871_v15 = vadd.f32 %v870_v13, %v1897_v37  ;;  %v912_v38 = vadd.f32 %v911_v14, %v1903_v59 }
 0x5f6   :  { %v872_v17 = vpop.f32.mrf.mxu0  ;;  %v1460_v18 = vpop.f32.mrf.mxu1 }
 0x5f7   :  { %v923_v20 = vadd.f32 %v920_v12, %v871_v15  ;;  %v873_v26 = vadd.f32 %v872_v17, %v1900_v42 }
 0x5f8   :  { %v874_v22 = vpop.f32.mrf.mxu0  ;;  %v914_v23 = vpop.f32.mrf.mxu1 }
 0x5f9   :  { %v1255_v24 = vmul.f32 -1.442695, %v923_v20  ;;  %v930_v3 = vadd.f32 %v921_v27, %v873_v26  ;;  %v1040_v27 = vld [vmem:[#allocation3 + $0x50] ss:$12 sps:$4 sm:$0xff]  }
 0x5fa   :  { %v875_v29 = vpop.f32.mrf.mxu0  ;;  %v1461_v31 = vpop.f32.mrf.mxu1 }
 0x5fb   :  { %1597 = vpow2.f32 %v1255_v24  ;;  %v1256_v4 = vmul.f32 -1.442695, %v930_v3  ;;  %v1043_v3 = vunpack.c.l.bf16 %v1040_v27 }
 0x5fd   :  { %1599 = vpow2.f32 %v1256_v4 }
 0x608   :  { %v1598_v5 = vpop.eup %1597 }
 0x609   :  { %v927_v6 = vadd.f32 1.0, %v1598_v5 }
 0x60a   :  { %v1600_v7 = vpop.eup %1599 }
 0x60b   :  { %1601 = vrcp.f32 %v927_v6  ;;  %v934_v8 = vadd.f32 1.0, %v1600_v7 }
 0x60d   :  { %1603 = vrcp.f32 %v934_v8 }
 0x618   :  { %v1602_v53 = vpop.eup %1601 }
 0x619   :  { %v937_v54 = vmul.f32 %v1602_v53, %v912_v38 }
 0x61a   :  { %v1604_v56 = vpop.eup %1603 }
 0x61b   :  { %v938_v55 = vadd.f32 %v937_v54, %v922_v52  ;;  %v940_v57 = vsub.f32 1.0, %v1604_v56  ;;  %v942_v2 = vmul.f32 %v1604_v56, %v2111_v48  ;;  %v1070_v52 = vpop.permute.xlu0 %1069 }
 0x61d   :  { %1605 = vtanh.f32 %v938_v55 }
 0x62a   :  { %v1606_v58 = vpop.eup %1605 }
 0x62b   :  { %v941_v16 = vmul.f32 %v1606_v58, %v940_v57 }
 0x62d   :  { %v943_v62 = vadd.f32 %v942_v2, %v941_v16  ;;  %v1160_v16 = vld [vmem:[#allocation3 + $0x54] sm:$0xff] }
 0x62e   :  { %v1162_v2 = vunpack.c.l.bf16 %v1160_v16 }
 0x62f   :  { %v951_v63 = vsel %vm950_vm15, %v943_v62, -1.0  ;;  %v2167_v19 = vsel %vm950_vm15, %v943_v62, %v2111_v48  ;;  %v1649_v48 = vld [vmem:[#allocation6] ss:$12 sps:$4 sm:$0xff]  }
 0x630   :  { %953 = vst [vmem:[#allocation8 + $0x28] sm:$0xff] %v951_v63  ;;  %v956_v21 = vpack.c.bf16 %v2167_v19, %v2167_v19 }
 0x632   :  { %990 = vmatmul.mubr.bf16.vlgmr.msra.gmra.mxu0 %v956_v21  ;;  %1479 = vmatmul.mubr.bf16.vlgmr.msra.gmra.mxu1 %v956_v21 }
 0x633   :  { %1079 = vmatpush1.bf16.msra.mxu0 %v2115_v36  ;;  %1483 = vmatpush3.bf16.msra.mxu1 %v1634_v25  ;;  %v1039_v36 = vld [vmem:[#allocation3 + $0x48] sm:$0xff] }
 0x634   :  { %1080 = vmatprep.subr.bf16.mxu0 %v2119_v50  ;;  %1484 = vmatprep.subr.bf16.mxu1 %v1721_v0  ;;  %v1041_v50 = vunpack.c.l.bf16 %v1039_v36  ;;  %v1042_v17 = vunpack.c.h.bf16 %v1039_v36 }
 0x635   :  { %1110 = vmatprep.mubr.bf16.mxu0 %v1722_v1  ;;  %1498 = vmatprep.mubr.msk.bf16.mxu1 %vm1723_vm0, %v1721_v0  ;;  %v1637_v1 = vld [vmem:[#allocation6 + $0x60] ss:$12 sps:$4 sm:$0xff]   ;;  %vm1071_vm0 = vcmp.eq.s32.totalorder %v1070_v52, 1 }
 0x637   :  { %1081 = vmatpush1.bf16.msra.mxu0 %v2126_v49  ;;  %1485 = vmatpush3.bf16.msra.mxu1 %v1635_v28 }
 0x638   :  { %1082 = vmatprep.subr.bf16.mxu0 %v2130_v51  ;;  %1486 = vmatprep.subr.bf16.mxu1 %v1721_v0 }
 0x63b   :  { %1083 = vmatpush1.bf16.msra.mxu0 %v2134_v10  ;;  %1487 = vmatpush3.bf16.msra.mxu1 %v1636_v30 }
 0x63c   :  { %1084 = vmatprep.subr.bf16.mxu0 %v2138_v32  ;;  %1488 = vmatprep.subr.bf16.mxu1 %v1721_v0 }
 0x63f   :  { %1085 = vmatpush1.bf16.msra.mxu0 %v1637_v1  ;;  %1489 = vmatpush3.bf16.msra.mxu1 %v1638_v34 }
 0x640   :  { %1086 = vmatprep.subr.bf16.mxu0 %v1639_v33  ;;  %1490 = vmatprep.subr.bf16.mxu1 %v1721_v0 }
 0x643   :  { %1087 = vmatpush1.bf16.msra.mxu0 %v1640_v35  ;;  %1491 = vmatpush3.bf16.msra.mxu1 %v1641_v39  ;;  %v1163_v35 = vunpack.c.h.bf16 %v1160_v16 }
 0x644   :  { %1088 = vmatprep.subr.bf16.mxu0 %v1642_v40  ;;  %1492 = vmatprep.subr.bf16.mxu1 %v1721_v0 }
 0x647   :  { %1089 = vmatpush1.bf16.msra.mxu0 %v1643_v41  ;;  %1493 = vmatpush3.bf16.msra.mxu1 %v1644_v43 }
 0x648   :  { %1090 = vmatprep.subr.bf16.mxu0 %v1645_v44  ;;  %1494 = vmatprep.subr.bf16.mxu1 %v1721_v0 }
 0x64b   :  { %1091 = vmatpush1.bf16.msra.mxu0 %v1646_v45  ;;  %1495 = vmatpush3.bf16.msra.mxu1 %v1647_v46 }
 0x64c   :  { %1092 = vmatprep.subr.bf16.mxu0 %v1648_v47  ;;  %1496 = vmatprep.subr.bf16.mxu1 %v1721_v0  ;;  %v1164_v47 = vunpack.c.h.bf16 %v1040_v27 }
 0x64f   :  { %1093 = vmatpush1.bf16.msra.mxu0 %v1649_v48  ;;  %1497 = vmatpush3.bf16.msra.mxu1 %v1650_v61 }
 0x6f2   :  { %v991_v49 = vpop.f32.mrf.mxu0  ;;  %v1032_v51 = vpop.f32.mrf.mxu1 }
 0x6f3   :  { %v992_v10 = vadd.f32 %v991_v49, %v1897_v37  ;;  %v1033_v31 = vadd.f32 %v1032_v51, %v1903_v59  ;;  %v1191_v51 = vpop.permute.xlu1 %1190 }
 0x6f4   :  { %v993_v32 = vpop.f32.mrf.mxu0  ;;  %v1480_v9 = vpop.f32.mrf.mxu1  ;;  %vm1192_vm1 = vcmp.eq.s32.totalorder %v1191_v51, 1 }
 0x6f5   :  { %v1044_v11 = vadd.f32 %v1041_v50, %v992_v10  ;;  %v994_v15 = vadd.f32 %v993_v32, %v1900_v42 }
 0x6f6   :  { %v995_v12 = vpop.f32.mrf.mxu0  ;;  %v1035_v13 = vpop.f32.mrf.mxu1 }
 0x6f7   :  { %v1258_v14 = vmul.f32 -1.442695, %v1044_v11  ;;  %v1051_v20 = vadd.f32 %v1042_v17, %v994_v15 }
 0x6f8   :  { %v996_v0 = vpop.f32.mrf.mxu0  ;;  %v1481_v18 = vpop.f32.mrf.mxu1 }
 0x6f9   :  { %1607 = vpow2.f32 %v1258_v14  ;;  %v1259_v22 = vmul.f32 -1.442695, %v1051_v20 }
 0x6fb   :  { %1609 = vpow2.f32 %v1259_v22 }
 0x706   :  { %v1608_v23 = vpop.eup %1607 }
 0x707   :  { %v1048_v24 = vadd.f32 1.0, %v1608_v23 }
 0x708   :  { %v1610_v26 = vpop.eup %1609 }
 0x709   :  { %1611 = vrcp.f32 %v1048_v24  ;;  %v1055_v29 = vadd.f32 1.0, %v1610_v26 }
 0x70b   :  { %1613 = vrcp.f32 %v1055_v29 }
 0x716   :  { %v1612_v4 = vpop.eup %1611 }
 0x717   :  { %v1058_v5 = vmul.f32 %v1612_v4, %v1033_v31 }
 0x718   :  { %v1614_v7 = vpop.eup %1613 }
 0x719   :  { %v1059_v6 = vadd.f32 %v1058_v5, %v1043_v3  ;;  %v1061_v8 = vsub.f32 1.0, %v1614_v7  ;;  %v1063_v54 = vmul.f32 %v1614_v7, %v2167_v19 }
 0x71b   :  { %1615 = vtanh.f32 %v1059_v6 }
 0x728   :  { %v1616_v38 = vpop.eup %1615 }
 0x729   :  { %v1062_v53 = vmul.f32 %v1616_v38, %v1061_v8 }
 0x72b   :  { %v1064_v55 = vadd.f32 %v1063_v54, %v1062_v53 }
 0x72d   :  { %v1072_v56 = vsel %vm1071_vm0, %v1064_v55, -1.0  ;;  %v1075_v57 = vsel %vm1071_vm0, %v1064_v55, %v2167_v19 }
 0x72e   :  { %1074 = vst [vmem:[#allocation8 + $0x30] sm:$0xff] %v1072_v56  ;;  %v1077_v58 = vpack.c.bf16 %v1075_v57, %v1075_v57 }
 0x730   :  { %1111 = vmatmul.mubr.bf16.vlgmr.msra.gmra.mxu0 %v1077_v58  ;;  %1499 = vmatmul.mubr.bf16.vlgmr.msra.gmra.mxu1 %v1077_v58 }
 0x7f0   :  { %v1112_v60 = vpop.f32.mrf.mxu0  ;;  %v1153_v62 = vpop.f32.mrf.mxu1 }
 0x7f1   :  { %v1113_v63 = vadd.f32 %v1112_v60, %v1897_v37  ;;  %v1154_v46 = vadd.f32 %v1153_v62, %v1903_v59 }
 0x7f2   :  { %v1114_v21 = vpop.f32.mrf.mxu0  ;;  %v1500_v25 = vpop.f32.mrf.mxu1 }
 0x7f3   :  { %v1165_v28 = vadd.f32 %v1162_v2, %v1113_v63  ;;  %v1115_v33 = vadd.f32 %v1114_v21, %v1900_v42 }
 0x7f4   :  { %v1116_v30 = vpop.f32.mrf.mxu0  ;;  %v1156_v1 = vpop.f32.mrf.mxu1 }
 0x7f5   :  { %v1261_v34 = vmul.f32 -1.442695, %v1165_v28  ;;  %v1172_v40 = vadd.f32 %v1163_v35, %v1115_v33 }
 0x7f6   :  { %v1117_v19 = vpop.f32.mrf.mxu0  ;;  %v1501_v39 = vpop.f32.mrf.mxu1 }
 0x7f7   :  { %1617 = vpow2.f32 %v1261_v34  ;;  %v1262_v41 = vmul.f32 -1.442695, %v1172_v40 }
 0x7f9   :  { %1619 = vpow2.f32 %v1262_v41 }
 0x804   :  { %v1618_v43 = vpop.eup %1617 }
 0x805   :  { %v1169_v44 = vadd.f32 1.0, %v1618_v43 }
 0x806   :  { %v1620_v45 = vpop.eup %1619 }
 0x807   :  { %1621 = vrcp.f32 %v1169_v44  ;;  %v1176_v37 = vadd.f32 1.0, %v1620_v45 }
 0x809   :  { %1623 = vrcp.f32 %v1176_v37 }
 0x814   :  { %v1622_v48 = vpop.eup %1621 }
 0x815   :  { %v1179_v61 = vmul.f32 %v1622_v48, %v1154_v46 }
 0x816   :  { %v1624_v42 = vpop.eup %1623 }
 0x817   :  { %v1180_v36 = vadd.f32 %v1179_v61, %v1164_v47  ;;  %v1182_v50 = vsub.f32 1.0, %v1624_v42  ;;  %v1184_v32 = vmul.f32 %v1624_v42, %v1075_v57 }
 0x819   :  { %1625 = vtanh.f32 %v1180_v36 }
 0x826   :  { %v1626_v49 = vpop.eup %1625 }
 0x827   :  { %v1183_v10 = vmul.f32 %v1626_v49, %v1182_v50 }
 0x829   :  { %v1185_v9 = vadd.f32 %v1184_v32, %v1183_v10 }
 0x82b   :  { %v1193_v11 = vsel %vm1192_vm1, %v1185_v9, -1.0 }
 0x82c   :  { %1195 = vst [vmem:[#allocation8 + $0x38] sm:$0xff] %v1193_v11 }
 0x82d   :  { %1702 = shalt.err (!%p1699_p0)
}
 0x82e   :  { %s1726_s30 = smov 128   ;;  %s1727_s5 = smov 8  }
 0x82f   :  { %1209 = dma.vmem_to_hbm [thread:$0]  %s1204_s28, 1024, %s2202_s4, [#allocation5], %s1726_s30, %s1726_s30, %s1727_s5  }
 0x830   :  { %1715 = dma.done.wait [#allocation5], 1024  }
 0x831   :  { %1716 = vsyncadd [#allocation5], 4294966272 }
 0x832   :  { %1213 = vsyncpa [#allocation4], 1 }
 0x833   :  { %1214 = vsyncpa [#allocation7], 1 }
 0x834   :  { %1215 = vsyncpa [#allocation5], 1 }

</bundles_post_ra>
